<compile_context>
chip_gen: v6e
topology: v6e:2x2x1
jax: 0.10.0
libtpu: 0.0.40
codegen_flags: <defaults>
</compile_context>

<pallas_src>
import jax
import jax.numpy as jnp
from jax import lax
from jax.experimental import pallas as pl
from jax.experimental.pallas import tpu as pltpu


def _make_conv_relu_kernel(NB, H, W, Cin, Coutp):
    """Conv3x3(pad=1) + bias + ReLU for NB images per grid step (no pooling)."""
    Wp = W + 2
    M = NB * H * W

    def kernel(x_ref, w_ref, b_ref, o_ref):
        # x_ref: (NB, H+2, W+2, Cin) f32, zero-padded NHWC
        # w_ref: (9, Cin, Coutp)     bf16, tap index = kh*3 + kw
        # b_ref: (1, Coutp)          f32
        # o_ref: (NB*H*W, Coutp)     f32, lane-dense (Coutp multiple of 128)
        x = x_ref[...]                                         # single load of the block
        # column-shifted copies for the three kw taps; roll keeps slices tile-aligned
        shifted = [x[:, :, 0:W, :]]                            # kw = 0
        for kw in (1, 2):
            shifted.append(pltpu.roll(x, Wp - kw, axis=2)[:, :, 0:W, :])
        acc = jnp.zeros((M, Coutp), jnp.float32)
        for kh in range(3):
            for kw in range(3):
                # leading-dim row slice + free (NB,H,W)->M merge; bf16 only for the MXU
                lhs = shifted[kw][:, kh:kh + H].reshape(M, Cin).astype(jnp.bfloat16)
                acc = acc + jnp.dot(lhs, w_ref[3 * kh + kw],
                                    preferred_element_type=jnp.float32)
        o_ref[...] = jnp.maximum(acc + b_ref[...], 0.0).astype(o_ref.dtype)

    return kernel


def _make_conv_relu_pool_kernel(NB, H, W, Cin, Coutp):
    """Conv3x3(pad=1) + bias + ReLU + MaxPool2d(2, 2), fully fused."""
    H2, W2 = H // 2, W // 2
    M = NB * H * W2                       # rows per column phase

    def kernel(x_ref, w_ref, b_ref, o_ref):
        # x_ref: (NB, H+2, W+2, Cin) f32 padded;  o_ref: (NB*H2*W2, Coutp) f32 lane-dense
        # in-kernel column de-interleave (stride-2 sublane loads; no extra HBM copy)
        pe = x_ref[:, :, pl.ds(0, W2 + 1, stride=2), :]        # padded cols 0,2,...,W
        po = x_ref[:, :, pl.ds(1, W2 + 1, stride=2), :]        # padded cols 1,3,...,W+1
        pe0 = pe[:, :, 0:W2, :]                                # padded col 2j
        po0 = po[:, :, 0:W2, :]                                # padded col 2j+1
        pe1 = pltpu.roll(pe, W2, axis=2)[:, :, 0:W2, :]        # padded col 2j+2
        po1 = pltpu.roll(po, W2, axis=2)[:, :, 0:W2, :]        # padded col 2j+3
        # conv taps kw=0,1,2 for even / odd OUTPUT columns
        even_taps = (pe0, po0, pe1)
        odd_taps = (po0, pe1, po1)
        acc_e = jnp.zeros((M, Coutp), jnp.float32)
        acc_o = jnp.zeros((M, Coutp), jnp.float32)
        for kh in range(3):
            for kw in range(3):
                w_tap = w_ref[3 * kh + kw]
                lhs_e = even_taps[kw][:, kh:kh + H].reshape(M, Cin).astype(jnp.bfloat16)
                lhs_o = odd_taps[kw][:, kh:kh + H].reshape(M, Cin).astype(jnp.bfloat16)
                acc_e = acc_e + jnp.dot(lhs_e, w_tap, preferred_element_type=jnp.float32)
                acc_o = acc_o + jnp.dot(lhs_o, w_tap, preferred_element_type=jnp.float32)
        # column half of the pool = elementwise max of the two phases; bias + ReLU commute
        # with max (per-channel bias, monotone ReLU) so they are applied once afterwards.
        m = jnp.maximum(jnp.maximum(acc_e, acc_o) + b_ref[...], 0.0)   # (M, Coutp)
        # row half: rows enumerate (img, h, j); regroup h -> (h//2, h%2) on leading dims
        m = m.reshape(NB, H2, 2, W2, Coutp)
        m = jnp.maximum(m[:, :, 0], m[:, :, 1])                        # (NB, H2, W2, Coutp)
        o_ref[...] = m.reshape(NB * H2 * W2, Coutp).astype(o_ref.dtype)

    return kernel


def _vmem_capacity_bytes():
    cap = 64 * 1024 * 1024
    try:
        info = pltpu.get_tpu_info()
        cap = int(getattr(info, "vmem_capacity_bytes", cap))
    except Exception:
        pass
    return cap


def block_forward(x_nchw, weight, bias, *, maxpool=False):
    """Forward pass of `Block` (PyTorch NCHW in / NCHW out).

    x_nchw: (N, Cin, H, W) float32, weight: (Cout, Cin, 3, 3), bias: (Cout,)
    Returns (N, Cout, H, W) or (N, Cout, H//2, W//2) if maxpool.
    """
    N, Cin, H, W = x_nchw.shape
    Cout = weight.shape[0]
    Coutp = ((Cout + 127) // 128) * 128    # lane-dense output channels (padded, sliced later)

    # ---- boundary glue (plain JAX): layout change, halo pad, weight repacking ----
    x_nhwc = jnp.transpose(x_nchw, (0, 2, 3, 1)).astype(jnp.float32)
    x_pad = jnp.pad(x_nhwc, ((0, 0), (1, 1), (1, 1), (0, 0)))          # (N, H+2, W+2, Cin)
    # TODO(synk): fold the halo pad into the kernel (edge masks) to drop this HBM copy.
    w_taps = jnp.transpose(weight, (2, 3, 1, 0)).reshape(9, Cin, Cout)
    w_taps = jnp.pad(w_taps, ((0, 0), (0, 0), (0, Coutp - Cout))).astype(jnp.bfloat16)
    b2d = jnp.pad(bias.astype(jnp.float32), (0, Coutp - Cout)).reshape(1, Coutp)

    # ---- images per grid step: VMEM-aware cap; keep >= 2 grid steps for v7x megacore ----
    vmem_cap = _vmem_capacity_bytes()
    m_cap = 16384 if vmem_cap >= (100 << 20) else 8192
    nb = 1
    for cand in range(min(N, max(1, m_cap // (H * W))), 0, -1):
        if N % cand:
            continue
        if N >= 2 and N // cand < 2:
            continue                      # keep >= 2 grid steps so both v7x TCs get work
        nb = cand
        break
    # TODO(synk): for large H*W add a grid axis over H with a 2-row halo so one image's
    # block stays within VMEM (needed for big feature maps on v7x's 64 MiB/TC).
    # TODO(synk): for small Cin (<128), pack kw*Cin (or W*Cin) onto the lane axis to avoid
    # lane under-occupancy of the input tiles.

    cparams = pltpu.CompilerParams(
        dimension_semantics=("parallel",),
        vmem_limit_bytes=int(min(vmem_cap * 3 // 4, 100 * 1024 * 1024)),
    )

    Hp, Wp = H + 2, W + 2
    grid = (N // nb,)
    x_spec = pl.BlockSpec((nb, Hp, Wp, Cin), lambda n: (n, 0, 0, 0))
    w_spec = pl.BlockSpec((9, Cin, Coutp), lambda n: (0, 0, 0))
    b_spec = pl.BlockSpec((1, Coutp), lambda n: (0, 0))

    if not maxpool:
        assert W % 8 == 0, "kernel assumes W is a multiple of 8"
        kernel = _make_conv_relu_kernel(nb, H, W, Cin, Coutp)
        out = pl.pallas_call(
            kernel,
            out_shape=jax.ShapeDtypeStruct((N * H * W, Coutp), jnp.float32),
            grid=grid,
            in_specs=[x_spec, w_spec, b_spec],
            out_specs=pl.BlockSpec((nb * H * W, Coutp), lambda n: (n, 0)),
            compiler_params=cparams,
        )(x_pad, w_taps, b2d)
        out = out.reshape(N, H, W, Coutp)[..., :Cout]
    else:
        assert H % 2 == 0 and W % 16 == 0, "maxpool kernel assumes H even, W multiple of 16"
        H2, W2 = H // 2, W // 2
        kernel = _make_conv_relu_pool_kernel(nb, H, W, Cin, Coutp)
        out = pl.pallas_call(
            kernel,
            out_shape=jax.ShapeDtypeStruct((N * H2 * W2, Coutp), jnp.float32),
            grid=grid,
            in_specs=[x_spec, w_spec, b_spec],
            out_specs=pl.BlockSpec((nb * H2 * W2, Coutp), lambda n: (n, 0)),
            compiler_params=cparams,
        )(x_pad, w_taps, b2d)
        out = out.reshape(N, H2, W2, Coutp)[..., :Cout]

    return jnp.transpose(out, (0, 3, 1, 2))   # back to NCHW


def block_reference(x_nchw, weight, bias, *, maxpool=False):
    out = lax.conv_general_dilated(
        x_nchw, weight, window_strides=(1, 1), padding=((1, 1), (1, 1)),
        dimension_numbers=("NCHW", "OIHW", "NCHW"))
    out = out + bias[None, :, None, None]
    out = jnp.maximum(out, 0.0)
    if maxpool:
        out = lax.reduce_window(out, -jnp.inf, lax.max,
                                window_dimensions=(1, 1, 2, 2),
                                window_strides=(1, 1, 2, 2), padding="VALID")
    return out


if __name__ == "__main__":
    key = jax.random.PRNGKey(0)
    kx, kwt, kb = jax.random.split(key, 3)
    N, Cin, Cout, H, W = 2, 4, 8, 16, 16

    x = jax.random.normal(kx, (N, Cin, H, W), jnp.float32)
    weight = jax.random.normal(kwt, (Cout, Cin, 3, 3), jnp.float32) / jnp.sqrt(Cin * 9.0)
    bias = 0.1 * jax.random.normal(kb, (Cout,), jnp.float32)

    for maxpool in (False, True):
        y = jax.block_until_ready(block_forward(x, weight, bias, maxpool=maxpool))
        y_ref = block_reference(x, weight, bias, maxpool=maxpool)
        assert y.shape == y_ref.shape, (y.shape, y_ref.shape)
        err = float(jnp.max(jnp.abs(y - y_ref)))
        # bf16 MXU operands (f32 accumulation) -> allow ~1e-2-level deltas vs f32 reference
        assert err < 2e-2, f"maxpool={maxpool}: max abs err {err}"

    print("KERNEL_OK")
</pallas_src>

<mosaic_0001>
module attributes {stable_mosaic.version = 11 : i64} {
  func.func @kernel(%arg0: i32, %arg1: memref<1x18x18x4xf32, #tpu.memory_space<vmem>>, %arg2: memref<9x4x128xbf16, #tpu.memory_space<vmem>>, %arg3: memref<1x128xf32, #tpu.memory_space<vmem>>, %arg4: memref<256x128xf32, #tpu.memory_space<vmem>>) attributes {dimension_semantics = [#tpu.dimension_semantics<parallel>], iteration_bounds = array<i64: 2>, scalar_prefetch = 0 : i64, scratch_operands = 0 : i64, tpu.core_type = #tpu.core_type<tc>, window_params = [{transform_indices = @transform_0, window_bounds = array<i64: 1, 18, 18, 4>}, {pipeline_mode = #tpu.pipeline_mode<synchronous>, transform_indices = @transform_1, window_bounds = array<i64: 9, 4, 128>}, {pipeline_mode = #tpu.pipeline_mode<synchronous>, transform_indices = @transform_2, window_bounds = array<i64: 1, 128>}, {transform_indices = @transform_3, window_bounds = array<i64: 256, 128>}]} {
    %c0 = arith.constant 0 : index
    %c0_0 = arith.constant 0 : index
    %c0_1 = arith.constant 0 : index
    %c0_2 = arith.constant 0 : index
    %0 = vector.load %arg1[%c0, %c0_0, %c0_1, %c0_2] : memref<1x18x18x4xf32, #tpu.memory_space<vmem>>, vector<1x18x18x4xf32>
    %1 = vector.extract_strided_slice %0 {offsets = [0, 0, 0, 0], sizes = [1, 18, 16, 4], strides = [1, 1, 1, 1]} : vector<1x18x18x4xf32> to vector<1x18x16x4xf32>
    %c17_i32 = arith.constant 17 : i32
    %2 = tpu.dynamic_rotate %0 by %c17_i32 dim 2 : vector<1x18x18x4xf32>, i32 -> vector<1x18x18x4xf32>
    %3 = vector.extract_strided_slice %2 {offsets = [0, 0, 0, 0], sizes = [1, 18, 16, 4], strides = [1, 1, 1, 1]} : vector<1x18x18x4xf32> to vector<1x18x16x4xf32>
    %c16_i32 = arith.constant 16 : i32
    %4 = tpu.dynamic_rotate %0 by %c16_i32 dim 2 : vector<1x18x18x4xf32>, i32 -> vector<1x18x18x4xf32>
    %5 = vector.extract_strided_slice %4 {offsets = [0, 0, 0, 0], sizes = [1, 18, 16, 4], strides = [1, 1, 1, 1]} : vector<1x18x18x4xf32> to vector<1x18x16x4xf32>
    %cst = arith.constant 0.000000e+00 : f32
    %6 = vector.broadcast %cst : f32 to vector<256x128xf32>
    %7 = vector.extract_strided_slice %1 {offsets = [0, 0, 0, 0], sizes = [1, 16, 16, 4], strides = [1, 1, 1, 1]} : vector<1x18x16x4xf32> to vector<1x16x16x4xf32>
    %8 = vector.shape_cast %7 : vector<1x16x16x4xf32> to vector<256x4xf32>
    %9 = arith.truncf %8 : vector<256x4xf32> to vector<256x4xbf16>
    %c0_3 = arith.constant 0 : index
    %c0_4 = arith.constant 0 : index
    %c0_5 = arith.constant 0 : index
    %10 = vector.load %arg2[%c0_3, %c0_4, %c0_5] : memref<9x4x128xbf16, #tpu.memory_space<vmem>>, vector<1x4x128xbf16>
    %11 = vector.shape_cast %10 : vector<1x4x128xbf16> to vector<4x128xbf16>
    %cst_6 = arith.constant dense<0.000000e+00> : vector<256x128xf32>
    %12 = tpu.matmul %9, %11, %cst_6 {dimension_numbers = #tpu.dot_dimension_numbers<[1], [0], [0], [1], [0, 0, 1, 1], [], []>} : vector<256x4xbf16>, vector<4x128xbf16>, vector<256x128xf32> -> vector<256x128xf32>
    %13 = arith.addf %6, %12 : vector<256x128xf32>
    %14 = vector.extract_strided_slice %3 {offsets = [0, 0, 0, 0], sizes = [1, 16, 16, 4], strides = [1, 1, 1, 1]} : vector<1x18x16x4xf32> to vector<1x16x16x4xf32>
    %15 = vector.shape_cast %14 : vector<1x16x16x4xf32> to vector<256x4xf32>
    %16 = arith.truncf %15 : vector<256x4xf32> to vector<256x4xbf16>
    %c1 = arith.constant 1 : index
    %c0_7 = arith.constant 0 : index
    %c0_8 = arith.constant 0 : index
    %17 = vector.load %arg2[%c1, %c0_7, %c0_8] : memref<9x4x128xbf16, #tpu.memory_space<vmem>>, vector<1x4x128xbf16>
    %18 = vector.shape_cast %17 : vector<1x4x128xbf16> to vector<4x128xbf16>
    %cst_9 = arith.constant dense<0.000000e+00> : vector<256x128xf32>
    %19 = tpu.matmul %16, %18, %cst_9 {dimension_numbers = #tpu.dot_dimension_numbers<[1], [0], [0], [1], [0, 0, 1, 1], [], []>} : vector<256x4xbf16>, vector<4x128xbf16>, vector<256x128xf32> -> vector<256x128xf32>
    %20 = arith.addf %13, %19 : vector<256x128xf32>
    %21 = vector.extract_strided_slice %5 {offsets = [0, 0, 0, 0], sizes = [1, 16, 16, 4], strides = [1, 1, 1, 1]} : vector<1x18x16x4xf32> to vector<1x16x16x4xf32>
    %22 = vector.shape_cast %21 : vector<1x16x16x4xf32> to vector<256x4xf32>
    %23 = arith.truncf %22 : vector<256x4xf32> to vector<256x4xbf16>
    %c2 = arith.constant 2 : index
    %c0_10 = arith.constant 0 : index
    %c0_11 = arith.constant 0 : index
    %24 = vector.load %arg2[%c2, %c0_10, %c0_11] : memref<9x4x128xbf16, #tpu.memory_space<vmem>>, vector<1x4x128xbf16>
    %25 = vector.shape_cast %24 : vector<1x4x128xbf16> to vector<4x128xbf16>
    %cst_12 = arith.constant dense<0.000000e+00> : vector<256x128xf32>
    %26 = tpu.matmul %23, %25, %cst_12 {dimension_numbers = #tpu.dot_dimension_numbers<[1], [0], [0], [1], [0, 0, 1, 1], [], []>} : vector<256x4xbf16>, vector<4x128xbf16>, vector<256x128xf32> -> vector<256x128xf32>
    %27 = arith.addf %20, %26 : vector<256x128xf32>
    %28 = vector.extract_strided_slice %1 {offsets = [0, 1, 0, 0], sizes = [1, 16, 16, 4], strides = [1, 1, 1, 1]} : vector<1x18x16x4xf32> to vector<1x16x16x4xf32>
    %29 = vector.shape_cast %28 : vector<1x16x16x4xf32> to vector<256x4xf32>
    %30 = arith.truncf %29 : vector<256x4xf32> to vector<256x4xbf16>
    %c3 = arith.constant 3 : index
    %c0_13 = arith.constant 0 : index
    %c0_14 = arith.constant 0 : index
    %31 = vector.load %arg2[%c3, %c0_13, %c0_14] : memref<9x4x128xbf16, #tpu.memory_space<vmem>>, vector<1x4x128xbf16>
    %32 = vector.shape_cast %31 : vector<1x4x128xbf16> to vector<4x128xbf16>
    %cst_15 = arith.constant dense<0.000000e+00> : vector<256x128xf32>
    %33 = tpu.matmul %30, %32, %cst_15 {dimension_numbers = #tpu.dot_dimension_numbers<[1], [0], [0], [1], [0, 0, 1, 1], [], []>} : vector<256x4xbf16>, vector<4x128xbf16>, vector<256x128xf32> -> vector<256x128xf32>
    %34 = arith.addf %27, %33 : vector<256x128xf32>
    %35 = vector.extract_strided_slice %3 {offsets = [0, 1, 0, 0], sizes = [1, 16, 16, 4], strides = [1, 1, 1, 1]} : vector<1x18x16x4xf32> to vector<1x16x16x4xf32>
    %36 = vector.shape_cast %35 : vector<1x16x16x4xf32> to vector<256x4xf32>
    %37 = arith.truncf %36 : vector<256x4xf32> to vector<256x4xbf16>
    %c4 = arith.constant 4 : index
    %c0_16 = arith.constant 0 : index
    %c0_17 = arith.constant 0 : index
    %38 = vector.load %arg2[%c4, %c0_16, %c0_17] : memref<9x4x128xbf16, #tpu.memory_space<vmem>>, vector<1x4x128xbf16>
    %39 = vector.shape_cast %38 : vector<1x4x128xbf16> to vector<4x128xbf16>
    %cst_18 = arith.constant dense<0.000000e+00> : vector<256x128xf32>
    %40 = tpu.matmul %37, %39, %cst_18 {dimension_numbers = #tpu.dot_dimension_numbers<[1], [0], [0], [1], [0, 0, 1, 1], [], []>} : vector<256x4xbf16>, vector<4x128xbf16>, vector<256x128xf32> -> vector<256x128xf32>
    %41 = arith.addf %34, %40 : vector<256x128xf32>
    %42 = vector.extract_strided_slice %5 {offsets = [0, 1, 0, 0], sizes = [1, 16, 16, 4], strides = [1, 1, 1, 1]} : vector<1x18x16x4xf32> to vector<1x16x16x4xf32>
    %43 = vector.shape_cast %42 : vector<1x16x16x4xf32> to vector<256x4xf32>
    %44 = arith.truncf %43 : vector<256x4xf32> to vector<256x4xbf16>
    %c5 = arith.constant 5 : index
    %c0_19 = arith.constant 0 : index
    %c0_20 = arith.constant 0 : index
    %45 = vector.load %arg2[%c5, %c0_19, %c0_20] : memref<9x4x128xbf16, #tpu.memory_space<vmem>>, vector<1x4x128xbf16>
    %46 = vector.shape_cast %45 : vector<1x4x128xbf16> to vector<4x128xbf16>
    %cst_21 = arith.constant dense<0.000000e+00> : vector<256x128xf32>
    %47 = tpu.matmul %44, %46, %cst_21 {dimension_numbers = #tpu.dot_dimension_numbers<[1], [0], [0], [1], [0, 0, 1, 1], [], []>} : vector<256x4xbf16>, vector<4x128xbf16>, vector<256x128xf32> -> vector<256x128xf32>
    %48 = arith.addf %41, %47 : vector<256x128xf32>
    %49 = vector.extract_strided_slice %1 {offsets = [0, 2, 0, 0], sizes = [1, 16, 16, 4], strides = [1, 1, 1, 1]} : vector<1x18x16x4xf32> to vector<1x16x16x4xf32>
    %50 = vector.shape_cast %49 : vector<1x16x16x4xf32> to vector<256x4xf32>
    %51 = arith.truncf %50 : vector<256x4xf32> to vector<256x4xbf16>
    %c6 = arith.constant 6 : index
    %c0_22 = arith.constant 0 : index
    %c0_23 = arith.constant 0 : index
    %52 = vector.load %arg2[%c6, %c0_22, %c0_23] : memref<9x4x128xbf16, #tpu.memory_space<vmem>>, vector<1x4x128xbf16>
    %53 = vector.shape_cast %52 : vector<1x4x128xbf16> to vector<4x128xbf16>
    %cst_24 = arith.constant dense<0.000000e+00> : vector<256x128xf32>
    %54 = tpu.matmul %51, %53, %cst_24 {dimension_numbers = #tpu.dot_dimension_numbers<[1], [0], [0], [1], [0, 0, 1, 1], [], []>} : vector<256x4xbf16>, vector<4x128xbf16>, vector<256x128xf32> -> vector<256x128xf32>
    %55 = arith.addf %48, %54 : vector<256x128xf32>
    %56 = vector.extract_strided_slice %3 {offsets = [0, 2, 0, 0], sizes = [1, 16, 16, 4], strides = [1, 1, 1, 1]} : vector<1x18x16x4xf32> to vector<1x16x16x4xf32>
    %57 = vector.shape_cast %56 : vector<1x16x16x4xf32> to vector<256x4xf32>
    %58 = arith.truncf %57 : vector<256x4xf32> to vector<256x4xbf16>
    %c7 = arith.constant 7 : index
    %c0_25 = arith.constant 0 : index
    %c0_26 = arith.constant 0 : index
    %59 = vector.load %arg2[%c7, %c0_25, %c0_26] : memref<9x4x128xbf16, #tpu.memory_space<vmem>>, vector<1x4x128xbf16>
    %60 = vector.shape_cast %59 : vector<1x4x128xbf16> to vector<4x128xbf16>
    %cst_27 = arith.constant dense<0.000000e+00> : vector<256x128xf32>
    %61 = tpu.matmul %58, %60, %cst_27 {dimension_numbers = #tpu.dot_dimension_numbers<[1], [0], [0], [1], [0, 0, 1, 1], [], []>} : vector<256x4xbf16>, vector<4x128xbf16>, vector<256x128xf32> -> vector<256x128xf32>
    %62 = arith.addf %55, %61 : vector<256x128xf32>
    %63 = vector.extract_strided_slice %5 {offsets = [0, 2, 0, 0], sizes = [1, 16, 16, 4], strides = [1, 1, 1, 1]} : vector<1x18x16x4xf32> to vector<1x16x16x4xf32>
    %64 = vector.shape_cast %63 : vector<1x16x16x4xf32> to vector<256x4xf32>
    %65 = arith.truncf %64 : vector<256x4xf32> to vector<256x4xbf16>
    %c8 = arith.constant 8 : index
    %c0_28 = arith.constant 0 : index
    %c0_29 = arith.constant 0 : index
    %66 = vector.load %arg2[%c8, %c0_28, %c0_29] : memref<9x4x128xbf16, #tpu.memory_space<vmem>>, vector<1x4x128xbf16>
    %67 = vector.shape_cast %66 : vector<1x4x128xbf16> to vector<4x128xbf16>
    %cst_30 = arith.constant dense<0.000000e+00> : vector<256x128xf32>
    %68 = tpu.matmul %65, %67, %cst_30 {dimension_numbers = #tpu.dot_dimension_numbers<[1], [0], [0], [1], [0, 0, 1, 1], [], []>} : vector<256x4xbf16>, vector<4x128xbf16>, vector<256x128xf32> -> vector<256x128xf32>
    %69 = arith.addf %62, %68 : vector<256x128xf32>
    %c0_31 = arith.constant 0 : index
    %c0_32 = arith.constant 0 : index
    %70 = vector.load %arg3[%c0_31, %c0_32] : memref<1x128xf32, #tpu.memory_space<vmem>>, vector<1x128xf32>
    %71 = vector.broadcast %70 : vector<1x128xf32> to vector<256x128xf32>
    %72 = arith.addf %69, %71 : vector<256x128xf32>
    %cst_33 = arith.constant 0.000000e+00 : f32
    %73 = vector.broadcast %cst_33 : f32 to vector<256x128xf32>
    %74 = arith.maximumf %72, %73 : vector<256x128xf32>
    %c0_34 = arith.constant 0 : index
    %c0_35 = arith.constant 0 : index
    %75 = vector.load %arg4[%c0_34, %c0_35] : memref<256x128xf32, #tpu.memory_space<vmem>>, vector<256x128xf32>
    tpu.vector_store %arg4[%c0_34, %c0_35], %74 {strides = array<i32>} : memref<256x128xf32, #tpu.memory_space<vmem>>, vector<256x128xf32>,
    return
  }
  func.func @transform_0(%arg0: i32) -> (i32, i32, i32, i32) {
    %c0_i32 = arith.constant 0 : i32
    %c0_i32_0 = arith.constant 0 : i32
    %c0_i32_1 = arith.constant 0 : i32
    %c0_i32_2 = arith.constant 0 : i32
    return %arg0, %c0_i32, %c0_i32_0, %c0_i32_1 : i32, i32, i32, i32
  }
  func.func @transform_1(%arg0: i32) -> (i32, i32, i32) {
    %c0_i32 = arith.constant 0 : i32
    %c0_i32_0 = arith.constant 0 : i32
    %c0_i32_1 = arith.constant 0 : i32
    %c0_i32_2 = arith.constant 0 : i32
    return %c0_i32, %c0_i32_0, %c0_i32_1 : i32, i32, i32
  }
  func.func @transform_2(%arg0: i32) -> (i32, i32) {
    %c0_i32 = arith.constant 0 : i32
    %c0_i32_0 = arith.constant 0 : i32
    %c0_i32_1 = arith.constant 0 : i32
    return %c0_i32, %c0_i32_0 : i32, i32
  }
  func.func @transform_3(%arg0: i32) -> (i32, i32) {
    %c0_i32 = arith.constant 0 : i32
    %c0_i32_0 = arith.constant 0 : i32
    return %arg0, %c0_i32 : i32, i32
  }
}

</mosaic_0001>

<bundles_post_ra>
// kernel: tpu_custom_call.1
= control target key start
LH: loop header
LB: loop body
LE: loop exit
PB: predicated region body
PF: predicated region fallthrough
CT: control target
= control target key end

     0   :  { %8 = vsyncpa [#allocation3], 0  ;;  %s4964_s0 = inlined_call_operand.vmem [shape: f32[2,18,18,4], index: 0, kind: input, shape index: {}]   ;;  %s4965_s1 = inlined_call_operand.vmem [shape: bf16[9,4,128], index: 1, kind: input, shape index: {}]   ;;  %s4966_s2 = inlined_call_operand.vmem [shape: f32[1,128], index: 2, kind: input, shape index: {}]   ;;  %s4967_s3 = inlined_call_operand.hbm [shape: f32[512,128], index: 3, kind: output, shape index: {}]  }
   0x1   :  { %10 = vsyncpa [#allocation3 + $0x1], 0  ;;  %s3447_s12 = smov 0   ;;  %s3449_s13 = smov 0  }
   0x2   :  { %s3451_s14 = smov 0   ;;  %s3453_s15 = smov 0  }
   0x3 LB: > { %s3468_s16 = sadd.s32 4294967295, %s3422_s15   ;;  %s2684_s17 = sadd.s32 4294967294, %s3422_s15   ;;  %s3422_s15 = sphi %s3453_s15, %s5160_s15   ;;  %s3418_s14 = sphi %s3451_s14, %s5159_s14   ;;  %s3414_s13 = sphi %s3449_s13, %s5158_s13   ;;  %s3410_s12 = sphi %s3447_s12, %s5157_s12  }
   0x4   : > { %s3472_s18 = sadd.s32 1, %s3422_s15   ;;  %s91_s19 = sadd.s32 1, %s3418_s14 }
   0x5   : > { %s88_s20 = ssub.s32 %s3422_s15, %s3472_s18  ;;  %p101_p0 = scmp.ne.s32.totalorder %s3418_s14, %s3414_s13 }
   0x6   : > { %p89_p1 = scmp.eq.s32.totalorder %s88_s20, 0  ;;  %p102_p2 = scmp.eq.s32.totalorder %s3468_s16, 1 }
   0x7   : > { %p107_p3 = scmp.ne.s32.totalorder %s3414_s13, %s3410_s12  ;;  %p108_p4 = scmp.eq.s32.totalorder %s2684_s17, 1 }
   0x8   : > { %s3483_s21 = scalar_select %p89_p1, %s3418_s14, %s91_s19  }
   0x9   : > { %p3485_p5 = por %p102_p2, %p101_p0  ;;  %p3489_p6 = por %p108_p4, %p107_p3 }
   0xa   : > { %p2687_p7 = scmp.ge.s32.totalorder %s3422_s15, 1  ;;  %p140_p8 = scmp.lt.s32.totalorder %s3422_s15, 3 }
   0xc   : > { %p141_p9 = pnand %p2687_p7, %p140_p8 }
   0xe   : > { %144 = sbr.rel (%p141_p9) target bundleno = 542 (0x21e), region = 32 }
  0x13   : > { %v2690_v0 = vld [vmem:[%s4965_s1 + $0x2] sm:$0x3]  ;;  %vm507_vm0 = vcmask 1041408   ;;  %p164_p10 = scmp.lt.s32.totalorder %s3468_s16, 1  ;;  %v278_v2 = vld [vmem:[%s4965_s1] sm:$0x3] }
  0x14   : > { %3311 = vmatprep.subr.msk.bf16.mxu1 %vm507_vm0, %v2690_v0  ;;  %3310 = vmatprep.subr.msk.bf16.mxu0 %vm507_vm0, %v2690_v0  ;;  %v509_v1 = vsel %vm507_vm0, %v2690_v0, 0  ;;  %v2723_v3 = vld [vmem:[%s4965_s1 + $0x4] sm:$0x3]  ;;  %vm225_vm1 = vcmask 1047554   ;;  %vm327_vm2 = vcmask 1046528   ;;  %vm458_vm3 = vcmask 31744  }
  0x15   : > { %3309 = vmatpush3.bf16.msra.mxu1 %v509_v1  ;;  %3003 = vmatpush3.bf16.msra.mxu0 %v509_v1  ;;  %s165_s30 = scalar_select %p164_p10, %s3468_s16, 1  ;;  %v3524_v7 = vsel %vm507_vm0, %v278_v2, 0  ;;  %v1064_v13 = vsel %vm507_vm0, %v2723_v3, 0  ;;  %v3618_v63 = vld [vmem:[%s4965_s1 + $0x8] sm:$0x3]  ;;  %vm884_vm4 = vcmask 1045504  }
  0x16   : > { %3312 = vmatprep.subr.msk.bf16.mxu1 %vm507_vm0, %v278_v2  ;;  %3313 = vmatprep.subr.msk.bf16.mxu0 %vm507_vm0, %v2723_v3  ;;  %s161_s29 = sand.u32 1, %s3414_s13   ;;  %s3424_s19 = smov [#allocation2]  }
  0x17   : > { %s3320_s4 = smul.u32 432, %s165_s30  ;;  %s2688_s5 = sshll.u32 %s161_s29, 8 }
  0x18   : > { %s4775_s6 = scalar_lea.vmem [#allocation2], %s2688_s5  ;;  %s3366_s20 = sshll.u32 %s3424_s19, 4  ;;  %s3367_s20 = int_to_ptr.vmem [resolvable:$false] %s3366_s20 }
  0x19   : > { %s3514_s7 = scalar_lea.vmem %s4964_s0, %s3320_s4  ;;  %s2622_s8 = sshll.u32 %s4775_s6, 4  ;;  %s4918_s8 = int_to_ptr.vmem [resolvable:$true] %s2622_s8 }
  0x1a   : > { %v3517_v4 = vld [vmem:[%s3514_s7] sm:$0xff]  ;;  %v3520_v5 = vld [vmem:[%s3514_s7 + $0x8] sm:$0xff]  ;;  %v173_v6 = vld [vmem:[%s3514_s7 + $0x10] sm:$0x3]  ;;  %s3362_s17 = scalar_lea.vmem %s4918_s8, 4096  ;;  %s3368_s24 = scalar_lea.vmem %s3367_s20, 8192 }
  0x1b   : > { %v226_v8 = vrot.slane %v3517_v4, 6  ;;  %v328_v9 = vrot.slane %v3517_v4, 1  ;;  %v329_v10 = vrot.slane %v3520_v5, 1  ;;  %v3530_v11 = vld [vmem:[%s3514_s7 + $0xc0] sm:$0xff]  ;;  %v3533_v12 = vld [vmem:[%s3514_s7 + $0xc8] sm:$0xff]  ;;  %v3541_v18 = vld [vmem:[%s3514_s7 + $0x18] sm:$0xff]  ;;  %p3363_p11 = scmp.ne.s32.totalorder %s4918_s8, %s3362_s17  ;;  %p3369_p0 = scmp.lt.s32.totalorder %s4918_s8, %s3367_s20 }
  0x1c   : > { %v197_v14 = vld [vmem:[%s3514_s7 + $0xd0] sm:$0x3]  ;;  %v234_v15 = vrot.slane %v3530_v11, 6  ;;  %v368_v16 = vrot.slane %v3530_v11, 1  ;;  %v369_v17 = vrot.slane %v3533_v12, 1  ;;  %v3548_v21 = vld [vmem:[%s3514_s7 + $0x20] sm:$0xff]  ;;  %p3370_p1 = scmp.lt.s32.totalorder %s3368_s24, %s3362_s17 }
  0x1d   : > { %v3544_v19 = vsel %vm225_vm1, %v226_v8, %v173_v6  ;;  %v176_v22 = vld [vmem:[%s3514_s7 + $0x28] sm:$0x3]  ;;  %v227_v23 = vrot.slane %v3541_v18, 6  ;;  %v333_v24 = vrot.slane %v3541_v18, 1  ;;  %v330_v25 = vsel %vm327_vm2, %v328_v9, %v329_v10  ;;  %v3566_v33 = vld [vmem:[%s3514_s7 + $0xd8] sm:$0xff]  ;;  %v3573_v38 = vld [vmem:[%s3514_s7 + $0xe0] sm:$0xff]  ;;  %p3364_p12 = pnand %p3363_p11, %p3485_p5 }
  0x1e   : > { %v331_v26 = vrot.slane %v3544_v19, 1  ;;  %v3557_v28 = vsel %vm225_vm1, %v234_v15, %v197_v14  ;;  %v370_v29 = vsel %vm327_vm2, %v368_v16, %v369_v17  ;;  %v334_v32 = vrot.slane %v3548_v21, 1  ;;  %v3576_v39 = vld [vmem:[%s3514_s7 + $0x30] sm:$0xff]  ;;  %v200_v44 = vld [vmem:[%s3514_s7 + $0xe8] sm:$0x3]  ;;  %v3583_v45 = vld [vmem:[%s3514_s7 + $0x38] sm:$0xff]  ;;  %p3371_p2 = por %p3370_p1, %p3369_p0 }
  0x1f   : > { %v371_v30 = vrot.slane %v3557_v28, 1  ;;  %v3562_v31 = vsel %vm225_vm1, %v227_v23, %v176_v22  ;;  %v3586_v46 = vld [vmem:[%s3514_s7 + $0xf0] sm:$0xff]  ;;  %v235_v49 = vrot.slane %v3566_v33, 6  ;;  %v373_v50 = vrot.slane %v3566_v33, 1  ;;  %v179_v51 = vld [vmem:[%s3514_s7 + $0x40] sm:$0x3]  ;;  %p3365_p13 = pneg %p3364_p12 }
  0x20   : > { %v332_v34 = vsel %vm327_vm2, %v329_v10, %v331_v26  ;;  %v336_v35 = vrot.slane %v3562_v31, 1  ;;  %v335_v42 = vsel %vm327_vm2, %v333_v24, %v334_v32  ;;  %v3595_v52 = vld [vmem:[%s3514_s7 + $0xf8] sm:$0xff]  ;;  %v374_v54 = vrot.slane %v3573_v38, 1  ;;  %v203_v57 = vld [vmem:[%s3514_s7 + $0x100] sm:$0x3]  ;;  %v3605_v58 = vld [vmem:[%s3514_s7 + $0x48] sm:$0xff] }
  0x21   : > { %v440_v40 = vpack.c.bf16 %v332_v34, %v330_v25  ;;  %v372_v41 = vsel %vm327_vm2, %v369_v17, %v371_v30  ;;  %v228_v55 = vrot.slane %v3576_v39, 6  ;;  %v338_v56 = vrot.slane %v3576_v39, 1  ;;  %v3629_v6 = vld [vmem:[%s3514_s7 + $0x50] sm:$0xff]  ;;  %v182_v8 = vld [vmem:[%s3514_s7 + $0x58] sm:$0x3]  ;;  %v3639_v16 = vld [vmem:[%s3514_s7 + $0x108] sm:$0xff]  ;;  %p3372_p3 = pnand %p3371_p2, %p3365_p13 }
  0x22   : > { %v3588_v47 = vpack.c.bf16 %v372_v41, %v370_v29  ;;  %v337_v48 = vsel %vm327_vm2, %v334_v32, %v336_v35  ;;  %v3610_v59 = vsel %vm225_vm1, %v235_v49, %v200_v44  ;;  %v339_v60 = vrot.slane %v3583_v45, 1  ;;  %v3646_v24 = vld [vmem:[%s3514_s7 + $0x110] sm:$0xff]  ;;  %v206_v32 = vld [vmem:[%s3514_s7 + $0x118] sm:$0x3]  ;;  %v3659_v34 = vld [vmem:[%s3514_s7 + $0x60] sm:$0xff] }
  0x23   : > { %3004 = vmatprep.mubr.msk.bf16.mxu0 %vm458_vm3, %v440_v40  ;;  %v3598_v53 = vpack.c.bf16 %v337_v48, %v335_v42  ;;  %5005 = vst [vmem:[#allocation7_spill] sm:$0xff] %v3610_v59  ;;  %v236_v61 = vrot.slane %v3586_v46, 6  ;;  %v378_v62 = vrot.slane %v3586_v46, 1  ;;  %v375_v0 = vsel %vm327_vm2, %v373_v50, %v374_v54  ;;  %v3667_v44 = vld [vmem:[%s3514_s7 + $0x68] sm:$0xff]  ;;  %v3672_v48 = vld [vmem:[%s4965_s1 + $0x6] sm:$0x3] }
  0x24   : > { %5003 = vst [vmem:[#allocation5_spill] sm:$0xff] %v3588_v47  ;;  %3020 = vmatprep.mubr.msk.bf16.mxu1 %vm458_vm3, %v3588_v47  ;;  %v376_v1 = vrot.slane %v3610_v59, 1  ;;  %v3625_v2 = vsel %vm225_vm1, %v228_v55, %v179_v51  ;;  %v379_v3 = vrot.slane %v3595_v52, 1  ;;  %v340_v9 = vsel %vm327_vm2, %v338_v56, %v339_v60  ;;  %v185_v55 = vld [vmem:[%s3514_s7 + $0x70] sm:$0x3]  ;;  %v3683_v56 = vld [vmem:[%s3514_s7 + $0x120] sm:$0xff] }
  0x25   : > { %5004 = vst [vmem:[#allocation6_spill] sm:$0xff] %v3598_v53  ;;  %3005 = vmatmul.mubr.msk.bf16.vlgmr.msra.gmra.mxu0 %vm458_vm3, %v3598_v53  ;;  %v341_v10 = vrot.slane %v3625_v2, 1  ;;  %v3635_v14 = vsel %vm225_vm1, %v236_v61, %v203_v57  ;;  %v229_v15 = vrot.slane %v3605_v58, 6  ;;  %v343_v23 = vrot.slane %v3605_v58, 1  ;;  %v3686_v57 = vld [vmem:[%s3514_s7 + $0x128] sm:$0xff]  ;;  %v3765_v37 = vld [vmem:[%s3514_s7 + $0x150] sm:$0xff] }
  0x26   : > { %3071 = vmatpush3.bf16.msra.mxu0 %v1064_v13  ;;  %5006 = vst [vmem:[#allocation8_spill] sm:$0xff] %v3635_v14  ;;  %v377_v17 = vsel %vm327_vm2, %v374_v54, %v376_v1  ;;  %v380_v22 = vsel %vm327_vm2, %v378_v62, %v379_v3  ;;  %v381_v13 = vrot.slane %v3635_v14, 1  ;;  %v344_v30 = vrot.slane %v3629_v6, 1  ;;  %v3698_v1 = vld [vmem:[%s3514_s7 + $0x78] sm:$0xff] }
  0x27   : > { %3315 = vmatprep.subr.msk.bf16.mxu0 %vm507_vm0, %v3618_v63  ;;  %v3650_v25 = vpack.c.bf16 %v377_v17, %v375_v0  ;;  %v342_v26 = vsel %vm327_vm2, %v339_v60, %v341_v10  ;;  %v3654_v29 = vsel %vm225_vm1, %v229_v15, %v182_v8  ;;  %v237_v42 = vrot.slane %v3639_v16, 6  ;;  %v209_v10 = vld [vmem:[%s3514_s7 + $0x130] sm:$0x3] }
  0x28   : > { %v3661_v35 = vpack.c.bf16 %v342_v26, %v340_v9  ;;  %v382_v40 = vsel %vm327_vm2, %v379_v3, %v381_v13  ;;  %v346_v41 = vrot.slane %v3654_v29, 1  ;;  %v345_v50 = vsel %vm327_vm2, %v343_v23, %v344_v30  ;;  %v3717_v23 = vld [vmem:[%s3514_s7 + $0x80] sm:$0xff]  ;;  %v188_v26 = vld [vmem:[%s3514_s7 + $0x88] sm:$0x3] }
  0x29   : > { %5007 = vst [vmem:[#allocation9_spill] sm:$0xff] %v3650_v25  ;;  %3021 = vmatmul.mubr.msk.bf16.vlgmr.msra.gmra.mxu1 %vm458_vm3, %v3650_v25  ;;  %v3676_v49 = vpack.c.bf16 %v382_v40, %v380_v22  ;;  %v383_v51 = vrot.slane %v3639_v16, 1  ;;  %v384_v54 = vrot.slane %v3646_v24, 1  ;;  %v3693_v61 = vsel %vm225_vm1, %v237_v42, %v206_v32  ;;  %v3727_v42 = vld [vmem:[%s3514_s7 + $0x138] sm:$0xff] }
  0x2a   : > { %5008 = vst [vmem:[#allocation10_spill] sm:$0xff] %v3661_v35  ;;  %3037 = vmatpush3.bf16.msra.mxu1 %v3524_v7  ;;  %3008 = vmatprep.mubr.msk.bf16.mxu0 %vm458_vm3, %v3661_v35  ;;  %v347_v60 = vsel %vm327_vm2, %v344_v30, %v346_v41  ;;  %5010 = vst [vmem:[#allocation12_spill] sm:$0xff] %v3693_v61  ;;  %v230_v62 = vrot.slane %v3659_v34, 6  ;;  %v348_v0 = vrot.slane %v3659_v34, 1  ;;  %v386_v8 = vrot.slane %v3693_v61, 1 }
  0x2b   : > { %5009 = vst [vmem:[#allocation11_spill] sm:$0xff] %v3676_v49  ;;  %3024 = vmatprep.mubr.msk.bf16.mxu1 %vm458_vm3, %v3676_v49  ;;  %v3702_v7 = vpack.c.bf16 %v347_v60, %v345_v50  ;;  %v385_v3 = vsel %vm327_vm2, %v383_v51, %v384_v54  ;;  %v349_v9 = vrot.slane %v3667_v44, 1  ;;  %3314 = vmatprep.subr.msk.bf16.mxu1 %vm507_vm0, %v3672_v48  ;;  %v238_v17 = vrot.slane %v3683_v56, 6 }
  0x2c   : > { %v3711_v15 = vsel %vm225_vm1, %v230_v62, %v185_v55  ;;  %v388_v22 = vrot.slane %v3683_v56, 1  ;;  %v389_v13 = vrot.slane %v3686_v57, 1  ;;  %v387_v30 = vsel %vm327_vm2, %v384_v54, %v386_v8  ;;  %v3737_v54 = vld [vmem:[%s3514_s7 + $0x140] sm:$0xff]  ;;  %v3740_v62 = vld [vmem:[%s3514_s7 + $0x90] sm:$0xff] }
  0x2d   : > { %5011 = vst [vmem:[#allocation13_spill] sm:$0xff] %v3702_v7  ;;  %3009 = vmatmul.mubr.msk.bf16.gmra.mxu0 %vm458_vm3, %v3702_v7  ;;  %v350_v32 = vsel %vm327_vm2, %v348_v0, %v349_v9  ;;  %v351_v40 = vrot.slane %v3711_v15, 1  ;;  %v231_v41 = vrot.slane %v3698_v1, 6  ;;  %v3729_v50 = vpack.c.bf16 %v387_v30, %v385_v3 }
  0x2e   : > { %v3732_v51 = vsel %vm225_vm1, %v238_v17, %v209_v10  ;;  %v390_v55 = vsel %vm327_vm2, %v388_v22, %v389_v13  ;;  %v353_v60 = vrot.slane %v3698_v1, 1  ;;  %v354_v10 = vrot.slane %v3717_v23, 1  ;;  %v212_v17 = vld [vmem:[%s3514_s7 + $0x148] sm:$0x3] }
  0x2f   : > { %5012 = vst [vmem:[#allocation14_spill] sm:$0xff] %v3729_v50  ;;  %5013 = vst [vmem:[#allocation15_spill] sm:$0xff] %v3732_v51  ;;  %v352_v0 = vsel %vm327_vm2, %v349_v9, %v351_v40  ;;  %v391_v3 = vrot.slane %v3732_v51, 1  ;;  %v3745_v8 = vsel %vm225_vm1, %v231_v41, %v188_v26  ;;  %v239_v43 = vrot.slane %v3727_v42, 6  ;;  %v191_v9 = vld [vmem:[%s3514_s7 + $0xa0] sm:$0x3] }
  0x30   : > { %v3749_v22 = vpack.c.bf16 %v352_v0, %v350_v32  ;;  %v356_v30 = vrot.slane %v3745_v8, 1  ;;  %v393_v36 = vrot.slane %v3727_v42, 1  ;;  %v355_v40 = vsel %vm327_vm2, %v353_v60, %v354_v10  ;;  %v3761_v41 = vld [vmem:[%s3514_s7 + $0x98] sm:$0xff] }
  0x31   : > { %3025 = vmatmul.mubr.msk.bf16.gmra.mxu1 %vm458_vm3, %v3729_v50  ;;  %v392_v26 = vsel %vm327_vm2, %v389_v13, %v391_v3  ;;  %v394_v32 = vrot.slane %v3737_v54, 1  ;;  %v232_v0 = vrot.slane %v3740_v62, 6  ;;  %v3773_v13 = vsel %vm225_vm1, %v239_v43, %v212_v17  ;;  %v3777_v3 = vld [vmem:[%s3514_s7 + $0x158] sm:$0xff]  ;;  %v3780_v50 = vld [vmem:[%s3514_s7 + $0xa8] sm:$0xff] }
  0x32   : > { %5014 = vst [vmem:[#allocation16_spill] sm:$0xff] %v3749_v22  ;;  %3012 = vmatprep.mubr.msk.bf16.mxu0 %vm458_vm3, %v3749_v22  ;;  %v3769_v20 = vpack.c.bf16 %v392_v26, %v390_v55  ;;  %v357_v27 = vsel %vm327_vm2, %v354_v10, %v356_v30  ;;  %5016 = vst [vmem:[#allocation18_spill] sm:$0xff] %v3773_v13  ;;  %v358_v60 = vrot.slane %v3740_v62, 1  ;;  %v396_v55 = vrot.slane %v3773_v13, 1  ;;  %v215_v10 = vld [vmem:[%s3514_s7 + $0x160] sm:$0x3] }
  0x33   : > { %v3782_v49 = vpack.c.bf16 %v357_v27, %v355_v40  ;;  %v395_v25 = vsel %vm327_vm2, %v393_v36, %v394_v32  ;;  %v3787_v26 = vsel %vm225_vm1, %v232_v0, %v191_v9  ;;  %v359_v43 = vrot.slane %v3761_v41, 1  ;;  %v194_v36 = vld [vmem:[%s3514_s7 + $0xb8] sm:$0x3]  ;;  %v3802_v0 = vld [vmem:[%s3514_s7 + $0xb0] sm:$0xff]  ;;  %v3807_v22 = vld [vmem:[%s3514_s7 + $0x168] sm:$0xff] }
  0x34   : > { %5015 = vst [vmem:[#allocation17_spill] sm:$0xff] %v3769_v20  ;;  %3028 = vmatprep.mubr.msk.bf16.mxu1 %vm458_vm3, %v3769_v20  ;;  %v361_v17 = vrot.slane %v3787_v26, 1  ;;  %v240_v27 = vrot.slane %v3765_v37, 6  ;;  %v398_v30 = vrot.slane %v3765_v37, 1  ;;  %v397_v9 = vsel %vm327_vm2, %v394_v32, %v396_v55  ;;  %v3817_v32 = vld [vmem:[%s3514_s7 + $0x170] sm:$0xff] }
  0x35   : > { %5017 = vst [vmem:[#allocation19_spill] sm:$0xff] %v3782_v49  ;;  %3013 = vmatmul.mubr.msk.bf16.gmra.mxu0 %vm458_vm3, %v3782_v49  ;;  %v399_v40 = vrot.slane %v3777_v3, 1  ;;  %v233_v20 = vrot.slane %v3780_v50, 6  ;;  %v363_v47 = vrot.slane %v3780_v50, 1  ;;  %v3809_v7 = vpack.c.bf16 %v397_v9, %v395_v25  ;;  %v218_v25 = vld [vmem:[%s3514_s7 + $0x178] sm:$0x3] }
  0x36   : > { %v360_v35 = vsel %vm327_vm2, %v358_v60, %v359_v43  ;;  %v362_v53 = vsel %vm327_vm2, %v359_v43, %v361_v17  ;;  %v3814_v49 = vsel %vm225_vm1, %v240_v27, %v215_v10  ;;  %v364_v9 = vrot.slane %v3802_v0, 1 }
  0x37   : > { %5018 = vst [vmem:[#allocation20_spill] sm:$0xff] %v3809_v7  ;;  %5019 = vst [vmem:[#allocation21_spill] sm:$0xff] %v3814_v49  ;;  %v3819_v55 = vpack.c.bf16 %v362_v53, %v360_v35  ;;  %v400_v13 = vsel %vm327_vm2, %v398_v30, %v399_v40  ;;  %v401_v51 = vrot.slane %v3814_v49, 1  ;;  %v3824_v61 = vsel %vm225_vm1, %v233_v20, %v194_v36 }
  0x38   : > { %v366_v60 = vrot.slane %v3824_v61, 1  ;;  %v241_v43 = vrot.slane %v3807_v22, 6  ;;  %v403_v10 = vrot.slane %v3807_v22, 1  ;;  %v404_v20 = vrot.slane %v3817_v32, 1 }
  0x39   : > { %5020 = vst [vmem:[#allocation22_spill] sm:$0xff] %v3819_v55  ;;  %3029 = vmatmul.mubr.msk.bf16.gmra.mxu1 %vm458_vm3, %v3809_v7  ;;  %3016 = vmatprep.mubr.msk.bf16.mxu0 %vm458_vm3, %v3819_v55  ;;  %v402_v53 = vsel %vm327_vm2, %v399_v40, %v401_v51  ;;  %v885_v35 = vrot.slane %v3517_v4, 2  ;;  %v5021_v17 = vrot.slane %v3544_v19, 2  ;;  %v5022_v27 = vrot.slane %v3520_v5, 2 }
  0x3a   : > { %v3843_v36 = vpack.c.bf16 %v402_v53, %v400_v13  ;;  %v365_v49 = vsel %vm327_vm2, %v363_v47, %v364_v9  ;;  %v367_v7 = vsel %vm327_vm2, %v364_v9, %v366_v60  ;;  %v3848_v55 = vsel %vm225_vm1, %v241_v43, %v218_v25 }
  0x3b   : > { %v889_v30 = vsel %vm884_vm4, %v5022_v27, %v5021_v17  ;;  %v3850_v51 = vpack.c.bf16 %v367_v7, %v365_v49  ;;  %v405_v40 = vsel %vm327_vm2, %v403_v10, %v404_v20  ;;  %v406_v14 = vrot.slane %v3848_v55, 1 }
  0x3c   : > { %v5023_v19 = vmov %v5022_v27  ;;  %3032 = vmatprep.mubr.msk.bf16.mxu1 %vm458_vm3, %v3843_v36  ;;  %v262_v49 = vpack.c.bf16 %v3520_v5, %v3517_v4  ;;  %v5024_v7 = vrot.slane %v3548_v21, 2  ;;  %v5025_v25 = vrot.slane %v3541_v18, 2 }
  0x3d   : > { %v887_v59 = vsel %vm884_vm4, %v885_v35, %v5023_v19  ;;  %3017 = vmatmul.mubr.msk.bf16.gmra.mxu0 %vm458_vm3, %v3850_v51  ;;  %v407_v47 = vsel %vm327_vm2, %v404_v20, %v406_v14  ;;  %v895_v60 = vrot.slane %v3576_v39, 2  ;;  %v896_v4 = vrot.slane %v3583_v45, 2 }
  0x3e   : > { %v997_v13 = vpack.c.bf16 %v889_v30, %v887_v59  ;;  %v892_v9 = vsel %vm884_vm4, %v5025_v25, %v5024_v7  ;;  %v3870_v43 = vpack.c.bf16 %v407_v47, %v405_v40  ;;  %v5027_v59 = vrot.slane %v3562_v31, 2  ;;  %v3900_v47 = vld [vmem:[%s4965_s1 + $0xc] sm:$0x3] }
  0x3f   : > { %v5028_v10 = vmov %v5024_v7  ;;  %v898_v5 = vrot.slane %v3625_v2, 2  ;;  %v897_v53 = vsel %vm884_vm4, %v895_v60, %v896_v4  ;;  %v900_v17 = vrot.slane %v3605_v58, 2 }
  0x40   : > { %5026 = vst [vmem:[#allocation23_spill] sm:$0xff] %v3870_v43  ;;  %3072 = vmatprep.mubr.msk.bf16.mxu0 %vm458_vm3, %v997_v13  ;;  %v894_v14 = vsel %vm884_vm4, %v5028_v10, %v5027_v59  ;;  %v901_v27 = vrot.slane %v3629_v6, 2  ;;  %v903_v30 = vrot.slane %v3654_v29, 2  ;;  %v1478_v2 = vsel %vm507_vm0, %v3618_v63, 0 }
  0x41   : > { %v899_v20 = vsel %vm884_vm4, %v896_v4, %v898_v5  ;;  %3033 = vmatmul.mubr.msk.bf16.gmra.mxu1 %vm458_vm3, %v3870_v43  ;;  %v3884_v35 = vpack.c.bf16 %v894_v14, %v892_v9  ;;  %v905_v40 = vrot.slane %v3659_v34, 2  ;;  %v906_v19 = vrot.slane %v3667_v44, 2 }
  0x42   : > { %3038 = vmatprep.mubr.msk.bf16.mxu1 %vm458_vm3, %v262_v49  ;;  %v3887_v31 = vpack.c.bf16 %v899_v20, %v897_v53  ;;  %v908_v13 = vrot.slane %v3711_v15, 2  ;;  %v3904_v49 = vpack.c.bf16 %v3548_v21, %v3541_v18  ;;  %v3910_v63 = vpack.c.bf16 %v3583_v45, %v3576_v39  ;;  %v3933_v45 = vld [vmem:[%s4965_s1 + $0xa] sm:$0x3] }
  0x43   : > { %v902_v29 = vsel %vm884_vm4, %v900_v17, %v901_v27  ;;  %v904_v15 = vsel %vm884_vm4, %v901_v27, %v903_v30  ;;  %v1266_v7 = vsel %vm507_vm0, %v3672_v48, 0  ;;  %v907_v18 = vsel %vm884_vm4, %v905_v40, %v906_v19 }
  0x44   : > { %v909_v21 = vsel %vm884_vm4, %v906_v19, %v908_v13  ;;  %v3922_v25 = vpack.c.bf16 %v3533_v12, %v3530_v11  ;;  %v3928_v39 = vpack.c.bf16 %v3573_v38, %v3566_v33  ;;  %v3937_v48 = vpack.c.bf16 %v904_v15, %v902_v29 }
  0x45   : > { %3073 = vmatmul.mubr.msk.bf16.vlgmr.msra.gmra.mxu0 %vm458_vm3, %v3884_v35  ;;  %v3941_v9 = vpack.c.bf16 %v3595_v52, %v3586_v46  ;;  %v3945_v60 = vpack.c.bf16 %v909_v21, %v907_v18  ;;  %v910_v59 = vrot.slane %v3698_v1, 2  ;;  %v911_v10 = vrot.slane %v3717_v23, 2 }
  0x46   : > { %3139 = vmatpush3.bf16.msra.mxu0 %v1478_v2  ;;  %3076 = vmatprep.mubr.msk.bf16.mxu0 %vm458_vm3, %v3887_v31  ;;  %v913_v14 = vrot.slane %v3745_v8, 2  ;;  %v915_v4 = vrot.slane %v3740_v62, 2  ;;  %v916_v5 = vrot.slane %v3761_v41, 2  ;;  %v918_v53 = vrot.slane %v3787_v26, 2 }
  0x47   : > { %3317 = vmatprep.subr.msk.bf16.mxu0 %vm507_vm0, %v3900_v47  ;;  %v3957_v20 = vpack.c.bf16 %v3646_v24, %v3639_v16  ;;  %v3961_v17 = vpack.c.bf16 %v3629_v6, %v3605_v58  ;;  %v3967_v8 = vpack.c.bf16 %v3686_v57, %v3683_v56  ;;  %v3971_v26 = vpack.c.bf16 %v3667_v44, %v3659_v34 }
  0x48   : > { %v912_v27 = vsel %vm884_vm4, %v910_v59, %v911_v10  ;;  %v914_v30 = vsel %vm884_vm4, %v911_v10, %v913_v14  ;;  %v917_v58 = vsel %vm884_vm4, %v915_v4, %v916_v5  ;;  %v919_v6 = vsel %vm884_vm4, %v916_v5, %v918_v53  ;;  %v5029_v14 = vld [vmem:[#allocation7_spill] sm:$0xff] }
  0x49   : > { %3039 = vmatmul.mubr.msk.bf16.vlgmr.msra.gmra.mxu1 %vm458_vm3, %v3904_v49  ;;  %v3981_v2 = vpack.c.bf16 %v3737_v54, %v3727_v42  ;;  %v3985_v34 = vpack.c.bf16 %v914_v30, %v912_v27  ;;  %v920_v44 = vrot.slane %v3780_v50, 2  ;;  %v3990_v40 = vpack.c.bf16 %v3777_v3, %v3765_v37  ;;  %v5030_v27 = vld [vmem:[#allocation8_spill] sm:$0xff] }
  0x4a   : > { %3105 = vmatpush3.bf16.msra.mxu1 %v1266_v7  ;;  %3042 = vmatprep.mubr.msk.bf16.mxu1 %vm458_vm3, %v3910_v63  ;;  %v3994_v19 = vpack.c.bf16 %v919_v6, %v917_v58  ;;  %v921_v13 = vrot.slane %v3802_v0, 2  ;;  %v923_v29 = vrot.slane %v3824_v61, 2  ;;  %v4000_v15 = vpack.c.bf16 %v3817_v32, %v3807_v22 }
  0x4b   : > { %3316 = vmatprep.subr.msk.bf16.mxu1 %vm507_vm0, %v3933_v45  ;;  %v928_v7 = vrot.slane %v3557_v28, 2  ;;  %v925_v18 = vrot.slane %v3530_v11, 2  ;;  %v926_v21 = vrot.slane %v3533_v12, 2  ;;  %v4007_v59 = vpack.c.bf16 %v3717_v23, %v3698_v1 }
  0x4c   : > { %v4013_v61 = vpack.c.bf16 %v3761_v41, %v3740_v62  ;;  %v922_v28 = vsel %vm884_vm4, %v920_v44, %v921_v13  ;;  %v924_v11 = vsel %vm884_vm4, %v921_v13, %v923_v29  ;;  %v930_v62 = vrot.slane %v3566_v33, 2  ;;  %v5031_v13 = vld [vmem:[#allocation12_spill] sm:$0xff] }
  0x4d   : > { %3077 = vmatmul.mubr.msk.bf16.gmra.mxu0 %vm458_vm3, %v3937_v48  ;;  %v927_v12 = vsel %vm884_vm4, %v925_v18, %v926_v21  ;;  %v929_v10 = vsel %vm884_vm4, %v926_v21, %v928_v7  ;;  %v4023_v1 = vpack.c.bf16 %v924_v11, %v922_v28  ;;  %v931_v41 = vrot.slane %v3573_v38, 2  ;;  %v5032_v21 = vld [vmem:[#allocation15_spill] sm:$0xff] }
  0x4e   : > { %3080 = vmatprep.mubr.msk.bf16.mxu0 %vm458_vm3, %v3945_v60  ;;  %v4027_v23 = vpack.c.bf16 %v929_v10, %v927_v12  ;;  %v933_v4 = vrot.slane %v5029_v14, 2  ;;  %v935_v5 = vrot.slane %v3586_v46, 2  ;;  %v936_v53 = vrot.slane %v3595_v52, 2 }
  0x4f   : > { %v938_v30 = vrot.slane %v5030_v27, 2  ;;  %v4037_v58 = vpack.c.bf16 %v3802_v0, %v3780_v50  ;;  %v932_v33 = vsel %vm884_vm4, %v930_v62, %v931_v41  ;;  %v940_v0 = vrot.slane %v3639_v16, 2 }
  0x50   : > { %v934_v38 = vsel %vm884_vm4, %v931_v41, %v933_v4  ;;  %v937_v46 = vsel %vm884_vm4, %v935_v5, %v936_v53  ;;  %v941_v44 = vrot.slane %v3646_v24, 2  ;;  %v943_v29 = vrot.slane %v5031_v13, 2  ;;  %v5033_v41 = vld [vmem:[#allocation18_spill] sm:$0xff] }
  0x51   : > { %3043 = vmatmul.mubr.msk.bf16.gmra.mxu1 %vm458_vm3, %v3961_v17  ;;  %v939_v52 = vsel %vm884_vm4, %v936_v53, %v938_v30  ;;  %v4049_v6 = vpack.c.bf16 %v934_v38, %v932_v33  ;;  %v945_v7 = vrot.slane %v3683_v56, 2  ;;  %v946_v18 = vrot.slane %v3686_v57, 2  ;;  %v5034_v53 = vld [vmem:[#allocation21_spill] sm:$0xff] }
  0x52   : > { %3046 = vmatprep.mubr.msk.bf16.mxu1 %vm458_vm3, %v3971_v26  ;;  %v4053_v50 = vpack.c.bf16 %v939_v52, %v937_v46  ;;  %v948_v28 = vrot.slane %v5032_v21, 2  ;;  %v942_v11 = vsel %vm884_vm4, %v940_v0, %v941_v44  ;;  %v944_v16 = vsel %vm884_vm4, %v941_v44, %v943_v29  ;;  %v4103_v0 = vld [vmem:[%s3514_s7 + $0x180] sm:$0xff] }
  0x53   : > { %v947_v24 = vsel %vm884_vm4, %v945_v7, %v946_v18  ;;  %v4071_v56 = vpack.c.bf16 %v944_v16, %v942_v11  ;;  %v950_v10 = vrot.slane %v3727_v42, 2  ;;  %v951_v62 = vrot.slane %v3737_v54, 2  ;;  %v221_v7 = vld [vmem:[%s3514_s7 + $0x190] sm:$0x3]  ;;  %v5035_v11 = vld [vmem:[#allocation6_spill] sm:$0xff] }
  0x54   : > { %v949_v12 = vsel %vm884_vm4, %v946_v18, %v948_v28  ;;  %v953_v14 = vrot.slane %v5033_v41, 2  ;;  %v955_v4 = vrot.slane %v3765_v37, 2  ;;  %v956_v5 = vrot.slane %v3777_v3, 2  ;;  %v5036_v41 = vld [vmem:[#allocation10_spill] sm:$0xff] }
  0x55   : > { %3081 = vmatmul.mubr.msk.bf16.gmra.mxu0 %vm458_vm3, %v3985_v34  ;;  %v4075_v57 = vpack.c.bf16 %v949_v12, %v947_v24  ;;  %v958_v27 = vrot.slane %v5034_v53, 2  ;;  %v952_v30 = vsel %vm884_vm4, %v950_v10, %v951_v62  ;;  %v960_v38 = vrot.slane %v3807_v22, 2  ;;  %v5041_v53 = vld [vmem:[#allocation5_spill] sm:$0xff] }
  0x56   : > { %3084 = vmatprep.mubr.msk.bf16.mxu0 %vm458_vm3, %v3994_v19  ;;  %v954_v42 = vsel %vm884_vm4, %v951_v62, %v953_v14  ;;  %v957_v54 = vsel %vm884_vm4, %v955_v4, %v956_v5  ;;  %v961_v46 = vrot.slane %v3817_v32, 2  ;;  %v963_v52 = vrot.slane %v3848_v55, 2  ;;  %v4118_v32 = vld [vmem:[%s3514_s7 + $0x188] sm:$0xff]  ;;  %v2825_v62 = vld [vmem:[%s4965_s1 + $0x10] sm:$0x3]  ;;  %v5037_v14 = vld [vmem:[#allocation13_spill] sm:$0xff] }
  0x57   : > { %v959_v37 = vsel %vm884_vm4, %v956_v5, %v958_v27  ;;  %v4093_v3 = vpack.c.bf16 %v954_v42, %v952_v30  ;;  %v242_v29 = vrot.slane %v4103_v0, 6  ;;  %v1674_v55 = vrot.slane %v4118_v32, 2  ;;  %v5039_v5 = vld [vmem:[#allocation19_spill] sm:$0xff]  ;;  %v5042_v27 = vld [vmem:[#allocation9_spill] sm:$0xff]  ;;  %v5044_v42 = vld [vmem:[#allocation14_spill] sm:$0xff] }
  0x58   : > { %v4097_v33 = vpack.c.bf16 %v959_v37, %v957_v54  ;;  %v962_v44 = vsel %vm884_vm4, %v960_v38, %v961_v46  ;;  %v964_v13 = vsel %vm884_vm4, %v961_v46, %v963_v52  ;;  %v1673_v21 = vrot.slane %v4103_v0, 2  ;;  %v5043_v30 = vld [vmem:[#allocation11_spill] sm:$0xff]  ;;  %v5045_v54 = vld [vmem:[#allocation17_spill] sm:$0xff]  ;;  %v5046_v37 = vld [vmem:[#allocation20_spill] sm:$0xff] }
  0x59   : > { %3047 = vmatmul.mubr.msk.bf16.gmra.mxu1 %vm458_vm3, %v4007_v59  ;;  %v4115_v22 = vpack.c.bf16 %v964_v13, %v962_v44  ;;  %v260_v18 = vsel %vm225_vm1, %v242_v29, %v221_v7  ;;  %v1889_v10 = vsel %vm507_vm0, %v3900_v47, 0  ;;  %v1687_v4 = vsel %vm507_vm0, %v3933_v45, 0  ;;  %v2808_v47 = vld [vmem:[%s4965_s1 + $0xe] sm:$0x3]  ;;  %v4206_v29 = vld [vmem:[%s3514_s7 + $0x198] sm:$0xff] }
  0x5a   : > { %3050 = vmatprep.mubr.msk.bf16.mxu1 %vm458_vm3, %v4013_v61  ;;  %v1676_v28 = vrot.slane %v260_v18, 2  ;;  %v1675_v16 = vsel %vm884_vm4, %v1673_v21, %v1674_v55  ;;  %v5040_v45 = vld [vmem:[#allocation22_spill] sm:$0xff]  ;;  %v1465_v38 = vrot.slane %v4118_v32, 1  ;;  %v1464_v46 = vrot.slane %v4103_v0, 1 }
  0x5b   : > { %v1467_v52 = vrot.slane %v260_v18, 1  ;;  %v243_v7 = vrot.slane %v4206_v29, 6  ;;  %v4214_v18 = vld [vmem:[%s3514_s7 + $0x1a0] sm:$0xff]  ;;  %v2087_v21 = vrot.slane %v4206_v29, 1 }
  0x5c   : > { %v1677_v24 = vsel %vm884_vm4, %v1674_v55, %v1676_v28  ;;  %v1466_v44 = vsel %vm327_vm2, %v1464_v46, %v1465_v38  ;;  %v2088_v28 = vrot.slane %v4214_v18, 1 }
  0x5d   : > { %3085 = vmatmul.mubr.msk.bf16.gmra.mxu0 %vm458_vm3, %v4023_v1  ;;  %v4131_v12 = vpack.c.bf16 %v1677_v24, %v1675_v16  ;;  %v1468_v13 = vsel %vm327_vm2, %v1465_v38, %v1467_v52 }
  0x5e   : > { %3088 = vmatprep.mubr.msk.bf16.mxu0 %vm458_vm3, %v4027_v23  ;;  %v4211_v55 = vpack.c.bf16 %v1468_v13, %v1466_v44 }
  0x60   : > { %5047 = vst [vmem:[#allocation7_spill] sm:$0xff] %v4211_v55 }
  0x61   : > { %3051 = vmatmul.mubr.msk.bf16.gmra.mxu1 %vm458_vm3, %v4037_v58 }
  0x62   : > { %3054 = vmatprep.mubr.msk.bf16.mxu1 %vm458_vm3, %v3922_v25 }
  0x65   : > { %3089 = vmatmul.mubr.msk.bf16.gmra.mxu0 %vm458_vm3, %v4049_v6 }
  0x66   : > { %3092 = vmatprep.mubr.msk.bf16.mxu0 %vm458_vm3, %v4053_v50 }
  0x69   : > { %3055 = vmatmul.mubr.msk.bf16.gmra.mxu1 %vm458_vm3, %v3928_v39 }
  0x6a   : > { %3058 = vmatprep.mubr.msk.bf16.mxu1 %vm458_vm3, %v3941_v9 }
  0x6d   : > { %3093 = vmatmul.mubr.msk.bf16.gmra.mxu0 %vm458_vm3, %v4071_v56 }
  0x6e   : > { %3096 = vmatprep.mubr.msk.bf16.mxu0 %vm458_vm3, %v4075_v57 }
  0x71   : > { %3059 = vmatmul.mubr.msk.bf16.gmra.mxu1 %vm458_vm3, %v3957_v20 }
  0x72   : > { %3062 = vmatprep.mubr.msk.bf16.mxu1 %vm458_vm3, %v3967_v8 }
  0x75   : > { %3097 = vmatmul.mubr.msk.bf16.gmra.mxu0 %vm458_vm3, %v4093_v3 }
  0x76   : > { %3100 = vmatprep.mubr.msk.bf16.mxu0 %vm458_vm3, %v4097_v33 }
  0x79   : > { %3063 = vmatmul.mubr.msk.bf16.gmra.mxu1 %vm458_vm3, %v3981_v2 }
  0x7a   : > { %3066 = vmatprep.mubr.msk.bf16.mxu1 %vm458_vm3, %v3990_v40 }
  0x7d   : > { %3101 = vmatmul.mubr.msk.bf16.gmra.mxu0 %vm458_vm3, %v4115_v22 }
  0x7e   : > { %3140 = vmatprep.mubr.msk.bf16.mxu0 %vm458_vm3, %v5035_v11  ;;  %v224_v11 = vld [vmem:[%s3514_s7 + $0x1a8] sm:$0x3]  ;;  %s2848_s7 = sshll.u32 %s3468_s16, 12  ;;  %s4924_s16 = scalar_lea.sflag [#allocation3], %s161_s29 }
  0x7f   : > { %v4222_v16 = vsel %vm225_vm1, %v243_v7, %v224_v11  ;;  %s4916_s11 = scalar_lea.hbm %s4967_s3, %s2848_s7 }
  0x80   : > { %v2090_v24 = vrot.slane %v4222_v16, 1 }
  0x81   : > { %3067 = vmatmul.mubr.msk.bf16.gmra.mxu1 %vm458_vm3, %v4000_v15 }
  0x82   : > { %3106 = vmatprep.mubr.msk.bf16.mxu1 %vm458_vm3, %v3904_v49  ;;  %v5038_v49 = vld [vmem:[#allocation16_spill] sm:$0xff]  ;;  %v4235_v38 = vsel %vm327_vm2, %v2088_v28, %v2090_v24 }
  0x83   : > { %5049 = vst [vmem:[#allocation12_spill] sm:$0xff] %v4235_v38 }
  0x85   : > { %3141 = vmatmul.mubr.msk.bf16.vlgmr.msra.gmra.mxu0 %vm458_vm3, %v5036_v41 }
  0x86   : > { %3207 = vmatpush3.bf16.msra.mxu0 %v1889_v10  ;;  %3144 = vmatprep.mubr.msk.bf16.mxu0 %vm458_vm3, %v5037_v14  ;;  %v1259_v10 = vpack.c.bf16 %v4118_v32, %v4103_v0  ;;  %v2310_v0 = vsel %vm507_vm0, %v2825_v62, 0 }
  0x87   : > { %3319 = vmatprep.subr.msk.bf16.mxu0 %vm507_vm0, %v2825_v62 }
  0x89   : > { %3107 = vmatmul.mubr.msk.bf16.vlgmr.msra.gmra.mxu1 %vm458_vm3, %v3910_v63 }
  0x8a   : > { %3173 = vmatpush3.bf16.msra.mxu1 %v1687_v4  ;;  %3110 = vmatprep.mubr.msk.bf16.mxu1 %vm458_vm3, %v3961_v17  ;;  %v4232_v4 = vsel %vm327_vm2, %v2087_v21, %v2088_v28  ;;  %v1882_v21 = vpack.c.bf16 %v4214_v18, %v4206_v29 }
  0x8b   : > { %3318 = vmatprep.subr.msk.bf16.mxu1 %vm507_vm0, %v2808_v47  ;;  %5048 = vst [vmem:[#allocation8_spill] sm:$0xff] %v4232_v4 }
  0x8d   : > { %3145 = vmatmul.mubr.msk.bf16.gmra.mxu0 %vm458_vm3, %v5038_v49 }
  0x8e   : > { %3148 = vmatprep.mubr.msk.bf16.mxu0 %vm458_vm3, %v5039_v5 }
  0x91   : > { %3111 = vmatmul.mubr.msk.bf16.gmra.mxu1 %vm458_vm3, %v3971_v26 }
  0x92   : > { %3114 = vmatprep.mubr.msk.bf16.mxu1 %vm458_vm3, %v4007_v59 }
  0x95   : > { %3149 = vmatmul.mubr.msk.bf16.gmra.mxu0 %vm458_vm3, %v5040_v45 }
  0x96   : > { %3152 = vmatprep.mubr.msk.bf16.mxu0 %vm458_vm3, %v3850_v51 }
  0x99   : > { %3115 = vmatmul.mubr.msk.bf16.gmra.mxu1 %vm458_vm3, %v4013_v61 }
  0x9a   : > { %3118 = vmatprep.mubr.msk.bf16.mxu1 %vm458_vm3, %v4037_v58 }
  0x9d   : > { %3153 = vmatmul.mubr.msk.bf16.gmra.mxu0 %vm458_vm3, %v5041_v53 }
  0x9e   : > { %3156 = vmatprep.mubr.msk.bf16.mxu0 %vm458_vm3, %v5042_v27 }
  0xa1   : > { %3119 = vmatmul.mubr.msk.bf16.gmra.mxu1 %vm458_vm3, %v3922_v25 }
  0xa2   : > { %3122 = vmatprep.mubr.msk.bf16.mxu1 %vm458_vm3, %v3928_v39 }
  0xa5   : > { %3157 = vmatmul.mubr.msk.bf16.gmra.mxu0 %vm458_vm3, %v5043_v30 }
  0xa6   : > { %3160 = vmatprep.mubr.msk.bf16.mxu0 %vm458_vm3, %v5044_v42 }
  0xa9   : > { %3123 = vmatmul.mubr.msk.bf16.gmra.mxu1 %vm458_vm3, %v3941_v9 }
  0xaa   : > { %3126 = vmatprep.mubr.msk.bf16.mxu1 %vm458_vm3, %v3957_v20 }
  0xad   : > { %3161 = vmatmul.mubr.msk.bf16.gmra.mxu0 %vm458_vm3, %v5045_v54 }
  0xae   : > { %3164 = vmatprep.mubr.msk.bf16.mxu0 %vm458_vm3, %v5046_v37 }
  0xb1   : > { %3127 = vmatmul.mubr.msk.bf16.gmra.mxu1 %vm458_vm3, %v3967_v8 }
  0xb2   : > { %3130 = vmatprep.mubr.msk.bf16.mxu1 %vm458_vm3, %v3981_v2 }
  0xb5   : > { %3165 = vmatmul.mubr.msk.bf16.gmra.mxu0 %vm458_vm3, %v3843_v36 }
  0xb6   : > { %3168 = vmatprep.mubr.msk.bf16.mxu0 %vm458_vm3, %v3870_v43 }
  0xb9   : > { %3131 = vmatmul.mubr.msk.bf16.gmra.mxu1 %vm458_vm3, %v3990_v40 }
  0xba   : > { %3134 = vmatprep.mubr.msk.bf16.mxu1 %vm458_vm3, %v4000_v15 }
  0xbd   : > { %3169 = vmatmul.mubr.msk.bf16.gmra.mxu0 %vm458_vm3, %v4211_v55 }
  0xbe   : > { %3208 = vmatprep.mubr.msk.bf16.mxu0 %vm458_vm3, %v3910_v63  ;;  %v2101_v63 = vsel %vm507_vm0, %v2808_v47, 0 }
  0xc1   : > { %3135 = vmatmul.mubr.msk.bf16.gmra.mxu1 %vm458_vm3, %v1259_v10 }
  0xc2   : > { %3174 = vmatprep.mubr.msk.bf16.mxu1 %vm458_vm3, %v3884_v35 }
  0xc5   : > { %3209 = vmatmul.mubr.msk.bf16.vlgmr.msra.gmra.mxu0 %vm458_vm3, %v3961_v17 }
  0xc6   : > { %3275 = vmatpush3.bf16.msra.mxu0 %v2310_v0  ;;  %3212 = vmatprep.mubr.msk.bf16.mxu0 %vm458_vm3, %v3971_v26 }
  0xc9   : > { %3175 = vmatmul.mubr.msk.bf16.vlgmr.msra.gmra.mxu1 %vm458_vm3, %v3887_v31 }
  0xca   : > { %3241 = vmatpush3.bf16.msra.mxu1 %v2101_v63  ;;  %3178 = vmatprep.mubr.msk.bf16.mxu1 %vm458_vm3, %v3937_v48 }
  0xcd   : > { %3213 = vmatmul.mubr.msk.bf16.gmra.mxu0 %vm458_vm3, %v4007_v59 }
  0xce   : > { %3216 = vmatprep.mubr.msk.bf16.mxu0 %vm458_vm3, %v4013_v61 }
  0xd1   : > { %3179 = vmatmul.mubr.msk.bf16.gmra.mxu1 %vm458_vm3, %v3945_v60 }
  0xd2   : > { %3182 = vmatprep.mubr.msk.bf16.mxu1 %vm458_vm3, %v3985_v34 }
  0xd5   : > { %3217 = vmatmul.mubr.msk.bf16.gmra.mxu0 %vm458_vm3, %v4037_v58 }
  0xd6   : > { %3220 = vmatprep.mubr.msk.bf16.mxu0 %vm458_vm3, %v3922_v25 }
  0xd9   : > { %3183 = vmatmul.mubr.msk.bf16.gmra.mxu1 %vm458_vm3, %v3994_v19 }
  0xda   : > { %3186 = vmatprep.mubr.msk.bf16.mxu1 %vm458_vm3, %v4023_v1 }
  0xdd   : > { %3221 = vmatmul.mubr.msk.bf16.gmra.mxu0 %vm458_vm3, %v3928_v39 }
  0xde   : > { %3224 = vmatprep.mubr.msk.bf16.mxu0 %vm458_vm3, %v3941_v9 }
  0xe1   : > { %3187 = vmatmul.mubr.msk.bf16.gmra.mxu1 %vm458_vm3, %v4027_v23 }
  0xe2   : > { %3190 = vmatprep.mubr.msk.bf16.mxu1 %vm458_vm3, %v4049_v6 }
  0xe5   : > { %v3006_v35 = vpop.f32.mrf.mxu0  ;;  %3225 = vmatmul.mubr.msk.bf16.gmra.mxu0 %vm458_vm3, %v3957_v20 }
  0xe6   : > { %3228 = vmatprep.mubr.msk.bf16.mxu0 %vm458_vm3, %v3967_v8 }
  0xe7   : > { %v545_v25 = vpop.f32.mrf.mxu0 }
  0xe9   : > { %v3007_v17 = vpop.f32.mrf.mxu0  ;;  %v4280_v26 = vpop.f32.mrf.mxu1  ;;  %3191 = vmatmul.mubr.msk.bf16.gmra.mxu1 %vm458_vm3, %v4053_v50 }
  0xea   : > { %3194 = vmatprep.mubr.msk.bf16.mxu1 %vm458_vm3, %v4071_v56 }
  0xeb   : > { %v4284_v39 = vpop.f32.mrf.mxu0  ;;  %v4288_v9 = vpop.f32.mrf.mxu1 }
  0xed   : > { %v4290_v59 = vpop.f32.mrf.mxu1  ;;  %v4292_v20 = vpop.f32.mrf.mxu0  ;;  %3229 = vmatmul.mubr.msk.bf16.gmra.mxu0 %vm458_vm3, %v3981_v2 }
  0xee   : > { %3232 = vmatprep.mubr.msk.bf16.mxu0 %vm458_vm3, %v3990_v40 }
  0xef   : > { %v4298_v8 = vpop.f32.mrf.mxu1  ;;  %v4300_v61 = vpop.f32.mrf.mxu0 }
  0xf1   : > { %v4302_v58 = vpop.f32.mrf.mxu1  ;;  %3195 = vmatmul.mubr.msk.bf16.gmra.mxu1 %vm458_vm3, %v4075_v57  ;;  %v4306_v32 = vpop.f32.mrf.mxu0 }
  0xf2   : > { %3198 = vmatprep.mubr.msk.bf16.mxu1 %vm458_vm3, %v4093_v3 }
  0xf3   : > { %v4310_v62 = vpop.f32.mrf.mxu1  ;;  %v4312_v2 = vpop.f32.mrf.mxu0 }
  0xf5   : > { %v4314_v47 = vpop.f32.mrf.mxu1  ;;  %v4316_v40 = vpop.f32.mrf.mxu0  ;;  %3233 = vmatmul.mubr.msk.bf16.gmra.mxu0 %vm458_vm3, %v4000_v15 }
  0xf6   : > { %3236 = vmatprep.mubr.msk.bf16.mxu0 %vm458_vm3, %v1259_v10 }
  0xf7   : > { %v4321_v52 = vpop.f32.mrf.mxu1  ;;  %v4323_v44 = vpop.f32.mrf.mxu0 }
  0xf9   : > { %v4325_v13 = vpop.f32.mrf.mxu1  ;;  %3199 = vmatmul.mubr.msk.bf16.gmra.mxu1 %vm458_vm3, %v4097_v33  ;;  %v4329_v7 = vpop.f32.mrf.mxu0 }
  0xfa   : > { %5050 = vst [vmem:[#allocation15_spill] sm:$0xff] %v4325_v13  ;;  %3202 = vmatprep.mubr.msk.bf16.mxu1 %vm458_vm3, %v4115_v22 }
  0xfb   : > { %v4335_v15 = vpop.f32.mrf.mxu1  ;;  %v4337_v28 = vpop.f32.mrf.mxu0 }
  0xfc   : > { %5051 = vst [vmem:[#allocation18_spill] sm:$0xff] %v4335_v15 }
  0xfd   : > { %v4339_v11 = vpop.f32.mrf.mxu1  ;;  %v4341_v24 = vpop.f32.mrf.mxu0  ;;  %3237 = vmatmul.mubr.msk.bf16.gmra.mxu0 %vm458_vm3, %v1882_v21 }
  0xfe   : > { %5052 = vst [vmem:[#allocation21_spill] sm:$0xff] %v4339_v11  ;;  %3276 = vmatprep.mubr.msk.bf16.mxu0 %vm458_vm3, %v3887_v31 }
  0xff   : > { %v4346_v10 = vpop.f32.mrf.mxu1  ;;  %v4348_v0 = vpop.f32.mrf.mxu0 }
 0x100   : > { %5053 = vst [vmem:[#allocation6_spill] sm:$0xff] %v4346_v10 }
 0x101   : > { %v4350_v63 = vpop.f32.mrf.mxu1  ;;  %3203 = vmatmul.mubr.msk.bf16.gmra.mxu1 %vm458_vm3, %v4131_v12  ;;  %v4354_v46 = vpop.f32.mrf.mxu0 }
 0x102   : > { %5054 = vst [vmem:[#allocation10_spill] sm:$0xff] %v4350_v63  ;;  %3242 = vmatprep.mubr.msk.bf16.mxu1 %vm458_vm3, %v5036_v41 }
 0x103   : > { %v4358_v4 = vpop.f32.mrf.mxu1  ;;  %v4360_v21 = vpop.f32.mrf.mxu0 }
 0x104   : > { %5055 = vst [vmem:[#allocation13_spill] sm:$0xff] %v4358_v4 }
 0x105   : > { %v4362_v38 = vpop.f32.mrf.mxu1  ;;  %v3074_v31 = vpop.f32.mrf.mxu0  ;;  %3277 = vmatmul.mubr.msk.bf16.vlgmr.msra.gmra.mxu0 %vm458_vm3, %v3937_v48 }
 0x106   : > { %5056 = vst [vmem:[#allocation16_spill] sm:$0xff] %v4362_v38  ;;  %3280 = vmatprep.mubr.msk.bf16.mxu0 %vm458_vm3, %v3945_v60 }
 0x107   : > { %v4368_v63 = vpop.f32.mrf.mxu1  ;;  %v1100_v10 = vpop.f32.mrf.mxu0 }
 0x108   : > { %5057 = vst [vmem:[#allocation19_spill] sm:$0xff] %v4368_v63 }
 0x109   : > { %v3040_v11 = vpop.f32.mrf.mxu1  ;;  %3243 = vmatmul.mubr.msk.bf16.vlgmr.msra.gmra.mxu1 %vm458_vm3, %v5037_v14  ;;  %v3075_v41 = vpop.f32.mrf.mxu0 }
 0x10a   : > { %v766_v4 = vadd.f32 %v3040_v11, %v3006_v35  ;;  %3246 = vmatprep.mubr.msk.bf16.mxu1 %vm458_vm3, %v5038_v49 }
 0x10b   : > { %v757_v38 = vpop.f32.mrf.mxu1  ;;  %v1103_v15 = vpop.f32.mrf.mxu0 }
 0x10c   : > { %v4374_v55 = vadd.f32 %v3074_v31, %v766_v4  ;;  %v758_v48 = vadd.f32 %v757_v38, %v545_v25 }
 0x10d   : > { %v3041_v13 = vpop.f32.mrf.mxu1  ;;  %v3078_v43 = vpop.f32.mrf.mxu0  ;;  %3281 = vmatmul.mubr.msk.bf16.gmra.mxu0 %vm458_vm3, %v3985_v34 }
 0x10e   : > { %v4378_v60 = vadd.f32 %v1100_v10, %v758_v48  ;;  %v769_v63 = vadd.f32 %v3041_v13, %v3007_v17  ;;  %3284 = vmatprep.mubr.msk.bf16.mxu0 %vm458_vm3, %v3994_v19 }
 0x10f   : > { %v760_v14 = vpop.f32.mrf.mxu1  ;;  %v1116_v35 = vpop.f32.mrf.mxu0 }
 0x110   : > { %v4382_v11 = vadd.f32 %v3075_v41, %v769_v63  ;;  %v761_v49 = vadd.f32 %v760_v14, %v4284_v39 }
 0x111   : > { %v3044_v4 = vpop.f32.mrf.mxu1  ;;  %3247 = vmatmul.mubr.msk.bf16.gmra.mxu1 %vm458_vm3, %v5039_v5  ;;  %v3079_v38 = vpop.f32.mrf.mxu0 }
 0x112   : > { %v4387_v25 = vadd.f32 %v1103_v15, %v761_v49  ;;  %v782_v34 = vadd.f32 %v3044_v4, %v4292_v20  ;;  %3250 = vmatprep.mubr.msk.bf16.mxu1 %vm458_vm3, %v5040_v45 }
 0x113   : > { %v773_v17 = vpop.f32.mrf.mxu1  ;;  %v1119_v19 = vpop.f32.mrf.mxu0 }
 0x114   : > { %v4392_v13 = vadd.f32 %v3078_v43, %v782_v34  ;;  %v774_v10 = vadd.f32 %v773_v17, %v4300_v61 }
 0x115   : > { %v3045_v63 = vpop.f32.mrf.mxu1  ;;  %v3082_v39 = vpop.f32.mrf.mxu0  ;;  %3285 = vmatmul.mubr.msk.bf16.gmra.mxu0 %vm458_vm3, %v4023_v1 }
 0x116   : > { %v4397_v5 = vadd.f32 %v1116_v35, %v774_v10  ;;  %v785_v15 = vadd.f32 %v3045_v63, %v4306_v32  ;;  %3288 = vmatprep.mubr.msk.bf16.mxu0 %vm458_vm3, %v4027_v23 }
 0x117   : > { %v776_v20 = vpop.f32.mrf.mxu1  ;;  %v1132_v45 = vpop.f32.mrf.mxu0 }
 0x118   : > { %v4402_v31 = vadd.f32 %v3079_v38, %v785_v15  ;;  %v777_v43 = vadd.f32 %v776_v20, %v4312_v2 }
 0x119   : > { %v3048_v41 = vpop.f32.mrf.mxu1  ;;  %3251 = vmatmul.mubr.msk.bf16.gmra.mxu1 %vm458_vm3, %v3850_v51  ;;  %v3083_v61 = vpop.f32.mrf.mxu0 }
 0x11a   : > { %v4407_v48 = vadd.f32 %v1119_v19, %v777_v43  ;;  %v798_v1 = vadd.f32 %v3048_v41, %v4316_v40  ;;  %3254 = vmatprep.mubr.msk.bf16.mxu1 %vm458_vm3, %v5041_v53 }
 0x11b   : > { %v789_v32 = vpop.f32.mrf.mxu1  ;;  %v1135_v23 = vpop.f32.mrf.mxu0 }
 0x11c   : > { %v4412_v14 = vadd.f32 %v3082_v39, %v798_v1  ;;  %v790_v35 = vadd.f32 %v789_v32, %v4323_v44 }
 0x11d   : > { %v3049_v49 = vpop.f32.mrf.mxu1  ;;  %v3086_v2 = vpop.f32.mrf.mxu0  ;;  %3289 = vmatmul.mubr.msk.bf16.gmra.mxu0 %vm458_vm3, %v4049_v6 }
 0x11e   : > { %v4417_v51 = vadd.f32 %v1132_v45, %v790_v35  ;;  %v801_v4 = vadd.f32 %v3049_v49, %v4329_v7  ;;  %3292 = vmatprep.mubr.msk.bf16.mxu0 %vm458_vm3, %v4053_v50 }
 0x11f   : > { %v792_v40 = vpop.f32.mrf.mxu1  ;;  %v1148_v53 = vpop.f32.mrf.mxu0 }
 0x120   : > { %v4422_v38 = vadd.f32 %v3083_v61, %v801_v4  ;;  %v793_v34 = vadd.f32 %v792_v40, %v4337_v28  ;;  %v2297_v4 = vrot.slane %v4214_v18, 2 }
 0x121   : > { %v3052_v17 = vpop.f32.mrf.mxu1  ;;  %3255 = vmatmul.mubr.msk.bf16.gmra.mxu1 %vm458_vm3, %v5042_v27  ;;  %v3087_v44 = vpop.f32.mrf.mxu0 }
 0x122   : > { %v4427_v19 = vadd.f32 %v1135_v23, %v793_v34  ;;  %v814_v6 = vadd.f32 %v3052_v17, %v4341_v24  ;;  %3258 = vmatprep.mubr.msk.bf16.mxu1 %vm458_vm3, %v5043_v30 }
 0x123   : > { %v805_v7 = vpop.f32.mrf.mxu1  ;;  %v1151_v50 = vpop.f32.mrf.mxu0 }
 0x124   : > { %v4432_v10 = vadd.f32 %v3086_v2, %v814_v6  ;;  %v806_v63 = vadd.f32 %v805_v7, %v4348_v0 }
 0x125   : > { %v3053_v39 = vpop.f32.mrf.mxu1  ;;  %v3090_v28 = vpop.f32.mrf.mxu0  ;;  %3293 = vmatmul.mubr.msk.bf16.gmra.mxu0 %vm458_vm3, %v4071_v56 }
 0x126   : > { %v4437_v27 = vadd.f32 %v1148_v53, %v806_v63  ;;  %v817_v15 = vadd.f32 %v3053_v39, %v4354_v46  ;;  %3296 = vmatprep.mubr.msk.bf16.mxu0 %vm458_vm3, %v4075_v57  ;;  %v5058_v63 = vld [vmem:[#allocation23_spill] sm:$0xff] }
 0x127   : > { %v808_v24 = vpop.f32.mrf.mxu1  ;;  %v1164_v30 = vpop.f32.mrf.mxu0 }
 0x128   : > { %v4442_v20 = vadd.f32 %v3087_v44, %v817_v15  ;;  %v809_v45 = vadd.f32 %v808_v24, %v4360_v21  ;;  %v5060_v15 = vld [vmem:[#allocation7_spill] sm:$0xff] }
 0x129   : > { %v3056_v43 = vpop.f32.mrf.mxu1  ;;  %3259 = vmatmul.mubr.msk.bf16.gmra.mxu1 %vm458_vm3, %v5044_v42  ;;  %v3091_v0 = vpop.f32.mrf.mxu0 }
 0x12a   : > { %v4447_v41 = vadd.f32 %v1151_v50, %v809_v45  ;;  %v830_v56 = vadd.f32 %v3056_v43, %v4280_v26  ;;  %3262 = vmatprep.mubr.msk.bf16.mxu1 %vm458_vm3, %v5045_v54  ;;  %v5061_v43 = vld [vmem:[#allocation18_spill] sm:$0xff] }
 0x12b   : > { %v821_v46 = vpop.f32.mrf.mxu1  ;;  %v1167_v57 = vpop.f32.mrf.mxu0 }
 0x12c   : > { %v4452_v61 = vadd.f32 %v3090_v28, %v830_v56  ;;  %v822_v1 = vadd.f32 %v821_v46, %v4288_v9  ;;  %v2296_v9 = vrot.slane %v4206_v29, 2  ;;  %v5059_v28 = vld [vmem:[#allocation15_spill] sm:$0xff] }
 0x12d   : > { %v3057_v32 = vpop.f32.mrf.mxu1  ;;  %v3094_v21 = vpop.f32.mrf.mxu0  ;;  %3297 = vmatmul.mubr.msk.bf16.gmra.mxu0 %vm458_vm3, %v4093_v3 }
 0x12e   : > { %v4457_v42 = vadd.f32 %v1164_v30, %v822_v1  ;;  %v833_v23 = vadd.f32 %v3057_v32, %v4290_v59  ;;  %3300 = vmatprep.mubr.msk.bf16.mxu0 %vm458_vm3, %v4097_v33  ;;  %v2299_v33 = vrot.slane %v4222_v16, 2 }
 0x12f   : > { %v824_v26 = vpop.f32.mrf.mxu1  ;;  %v1180_v54 = vpop.f32.mrf.mxu0 }
 0x130   : > { %v4462_v35 = vadd.f32 %v3091_v0, %v833_v23  ;;  %v825_v49 = vadd.f32 %v824_v26, %v4298_v8  ;;  %v2300_v16 = vsel %vm884_vm4, %v2297_v4, %v2299_v33  ;;  %v5063_v26 = vld [vmem:[#allocation6_spill] sm:$0xff] }
 0x131   : > { %v3060_v2 = vpop.f32.mrf.mxu1  ;;  %3263 = vmatmul.mubr.msk.bf16.gmra.mxu1 %vm458_vm3, %v5046_v37  ;;  %v3095_v3 = vpop.f32.mrf.mxu0  ;;  %v5067_v33 = vld [vmem:[#allocation10_spill] sm:$0xff] }
 0x132   : > { %v4469_v40 = vadd.f32 %v1167_v57, %v825_v49  ;;  %v846_v59 = vadd.f32 %v3060_v2, %v4302_v58  ;;  %3266 = vmatprep.mubr.msk.bf16.mxu1 %vm458_vm3, %v3843_v36  ;;  %v2298_v36 = vsel %vm884_vm4, %v2296_v9, %v2297_v4  ;;  %v5062_v57 = vld [vmem:[#allocation21_spill] sm:$0xff]  ;;  %v5064_v9 = vld [vmem:[#allocation12_spill] sm:$0xff] }
 0x133   : > { %v837_v53 = vpop.f32.mrf.mxu1  ;;  %v1183_v8 = vpop.f32.mrf.mxu0  ;;  %v2303_v39 = vpack.c.bf16 %v2300_v16, %v2298_v36  ;;  %v5065_v2 = vld [vmem:[#allocation8_spill] sm:$0xff] }
 0x134   : > { %v4475_v34 = vadd.f32 %v3094_v21, %v846_v59  ;;  %v838_v29 = vadd.f32 %v837_v53, %v4310_v62 }
 0x135   : > { %v3061_v17 = vpop.f32.mrf.mxu1  ;;  %v3098_v37 = vpop.f32.mrf.mxu0  ;;  %3301 = vmatmul.mubr.msk.bf16.gmra.mxu0 %vm458_vm3, %v4115_v22 }
 0x136   : > { %v4480_v18 = vadd.f32 %v1180_v54, %v838_v29  ;;  %v849_v58 = vadd.f32 %v3061_v17, %v4314_v47  ;;  %3304 = vmatprep.mubr.msk.bf16.mxu0 %vm458_vm3, %v4131_v12 }
 0x137   : > { %v840_v44 = vpop.f32.mrf.mxu1  ;;  %v1196_v6 = vpop.f32.mrf.mxu0 }
 0x138   : > { %v4487_v7 = vadd.f32 %v3095_v3, %v849_v58  ;;  %v841_v62 = vadd.f32 %v840_v44, %v4321_v52  ;;  %v5066_v3 = vpack.c.bf16 %v5064_v9, %v5065_v2 }
 0x139   : > { %v3064_v50 = vpop.f32.mrf.mxu1  ;;  %3267 = vmatmul.mubr.msk.bf16.gmra.mxu1 %vm458_vm3, %v5058_v63  ;;  %v3099_v22 = vpop.f32.mrf.mxu0 }
 0x13a   : > { %v4492_v47 = vadd.f32 %v1183_v8, %v841_v62  ;;  %v862_v12 = vadd.f32 %v3064_v50, %v5059_v28  ;;  %3270 = vmatprep.mubr.msk.bf16.mxu1 %vm458_vm3, %v5060_v15 }
 0x13b   : > { %v853_v24 = vpop.f32.mrf.mxu1  ;;  %v1199_v30 = vpop.f32.mrf.mxu0 }
 0x13c   : > { %v4497_v45 = vadd.f32 %v3098_v37, %v862_v12  ;;  %v854_v0 = vadd.f32 %v853_v24, %v5061_v43  ;;  %v5068_v37 = vld [vmem:[#allocation13_spill] sm:$0xff] }
 0x13d   : > { %v3065_v52 = vpop.f32.mrf.mxu1  ;;  %v3102_v56 = vpop.f32.mrf.mxu0  ;;  %3305 = vmatmul.mubr.msk.bf16.gmra.mxu0 %vm458_vm3, %v2303_v39  ;;  %v5070_v39 = vld [vmem:[#allocation19_spill] sm:$0xff] }
 0x13e   : > { %v4501_v46 = vadd.f32 %v1196_v6, %v854_v0  ;;  %v865_v1 = vadd.f32 %v3065_v52, %v5062_v57  ;;  %v5069_v6 = vld [vmem:[#allocation16_spill] sm:$0xff] }
 0x13f   : > { %v856_v32 = vpop.f32.mrf.mxu1  ;;  %v1212_v21 = vpop.f32.mrf.mxu0 }
 0x140   : > { %v4504_v23 = vadd.f32 %v3099_v22, %v865_v1  ;;  %v857_v54 = vadd.f32 %v856_v32, %v5063_v26 }
 0x141   : > { %v3068_v49 = vpop.f32.mrf.mxu1  ;;  %3271 = vmatmul.mubr.msk.bf16.gmra.mxu1 %vm458_vm3, %v5066_v3  ;;  %v3103_v4 = vpop.f32.mrf.mxu0 }
 0x142   : > { %v4511_v59 = vadd.f32 %v1199_v30, %v857_v54  ;;  %v878_v53 = vadd.f32 %v3068_v49, %v5067_v33 }
 0x143   : > { %v869_v8 = vpop.f32.mrf.mxu1  ;;  %v1215_v29 = vpop.f32.mrf.mxu0 }
 0x144   : > { %v4514_v17 = vadd.f32 %v3102_v56, %v878_v53  ;;  %v870_v58 = vadd.f32 %v869_v8, %v5068_v37 }
 0x145   : > { %v3069_v36 = vpop.f32.mrf.mxu1  ;;  %v3142_v16 = vpop.f32.mrf.mxu0 }
 0x146   : > { %v4517_v44 = vadd.f32 %v1212_v21, %v870_v58  ;;  %v881_v62 = vadd.f32 %v3069_v36, %v5069_v6 }
 0x147   : > { %v872_v50 = vpop.f32.mrf.mxu1  ;;  %v1514_v63 = vpop.f32.mrf.mxu0 }
 0x148   : > { %v4520_v22 = vadd.f32 %v3103_v4, %v881_v62  ;;  %v873_v28 = vadd.f32 %v872_v50, %v5070_v39 }
 0x149   : > { %v3108_v12 = vpop.f32.mrf.mxu1  ;;  %v3143_v15 = vpop.f32.mrf.mxu0 }
 0x14a   : > { %v4523_v24 = vadd.f32 %v1215_v29, %v873_v28  ;;  %v1431_v30 = vadd.f32 %v3108_v12, %v4374_v55 }
 0x14b   : > { %v1302_v43 = vpop.f32.mrf.mxu1  ;;  %v1517_v0 = vpop.f32.mrf.mxu0 }
 0x14c   : > { %v4526_v52 = vadd.f32 %v3142_v16, %v1431_v30  ;;  %v1429_v56 = vadd.f32 %v1302_v43, %v4378_v60 }
 0x14d   : > { %v3109_v57 = vpop.f32.mrf.mxu1  ;;  %v3146_v1 = vpop.f32.mrf.mxu0 }
 0x14e   : > { %v4529_v32 = vadd.f32 %v1514_v63, %v1429_v56  ;;  %v1432_v21 = vadd.f32 %v3109_v57, %v4382_v11 }
 0x14f   : > { %v1305_v26 = vpop.f32.mrf.mxu1  ;;  %v1530_v54 = vpop.f32.mrf.mxu0 }
 0x150   : > { %v4532_v49 = vadd.f32 %v3143_v15, %v1432_v21  ;;  %v1430_v9 = vadd.f32 %v1305_v26, %v4387_v25 }
 0x151   : > { %v3112_v2 = vpop.f32.mrf.mxu1  ;;  %v3147_v55 = vpop.f32.mrf.mxu0 }
 0x152   : > { %v4535_v3 = vadd.f32 %v1517_v0, %v1430_v9  ;;  %v1435_v4 = vadd.f32 %v3112_v2, %v4392_v13 }
 0x153   : > { %v1318_v33 = vpop.f32.mrf.mxu1  ;;  %v1533_v60 = vpop.f32.mrf.mxu0 }
 0x154   : > { %v4538_v53 = vadd.f32 %v3146_v1, %v1435_v4  ;;  %v1433_v8 = vadd.f32 %v1318_v33, %v4397_v5 }
 0x155   : > { %v3113_v29 = vpop.f32.mrf.mxu1  ;;  %v3150_v11 = vpop.f32.mrf.mxu0 }
 0x156   : > { %v4541_v37 = vadd.f32 %v1530_v54, %v1433_v8  ;;  %v1436_v58 = vadd.f32 %v3113_v29, %v4402_v31 }
 0x157   : > { %v1321_v36 = vpop.f32.mrf.mxu1  ;;  %v1546_v25 = vpop.f32.mrf.mxu0 }
 0x158   : > { %v4544_v16 = vadd.f32 %v3147_v55, %v1436_v58  ;;  %v1434_v6 = vadd.f32 %v1321_v36, %v4407_v48 }
 0x159   : > { %v3116_v62 = vpop.f32.mrf.mxu1  ;;  %v3151_v13 = vpop.f32.mrf.mxu0 }
 0x15a   : > { %v4547_v50 = vadd.f32 %v1533_v60, %v1434_v6  ;;  %v1439_v63 = vadd.f32 %v3116_v62, %v4412_v14 }
 0x15b   : > { %v1334_v39 = vpop.f32.mrf.mxu1  ;;  %v1549_v5 = vpop.f32.mrf.mxu0 }
 0x15c   : > { %v4550_v28 = vadd.f32 %v3150_v11, %v1439_v63  ;;  %v1437_v12 = vadd.f32 %v1334_v39, %v4417_v51 }
 0x15d   : > { %v3117_v15 = vpop.f32.mrf.mxu1  ;;  %v3154_v31 = vpop.f32.mrf.mxu0 }
 0x15e   : > { %v4553_v30 = vadd.f32 %v1546_v25, %v1437_v12  ;;  %v1440_v43 = vadd.f32 %v3117_v15, %v4422_v38 }
 0x15f   : > { %v1337_v0 = vpop.f32.mrf.mxu1  ;;  %v1562_v48 = vpop.f32.mrf.mxu0 }
 0x160   : > { %v4556_v56 = vadd.f32 %v3151_v13, %v1440_v43  ;;  %v1438_v57 = vadd.f32 %v1337_v0, %v4427_v19 }
 0x161   : > { %v3120_v1 = vpop.f32.mrf.mxu1  ;;  %v3155_v14 = vpop.f32.mrf.mxu0 }
 0x162   : > { %v4559_v21 = vadd.f32 %v1549_v5, %v1438_v57  ;;  %v1443_v26 = vadd.f32 %v3120_v1, %v4432_v10 }
 0x163   : > { %v1350_v54 = vpop.f32.mrf.mxu1  ;;  %v1565_v51 = vpop.f32.mrf.mxu0 }
 0x164   : > { %v4562_v9 = vadd.f32 %v3154_v31, %v1443_v26  ;;  %v1441_v2 = vadd.f32 %v1350_v54, %v4437_v27 }
 0x165   : > { %v3121_v55 = vpop.f32.mrf.mxu1  ;;  %v3158_v38 = vpop.f32.mrf.mxu0 }
 0x166   : > { %v4565_v4 = vadd.f32 %v1562_v48, %v1441_v2  ;;  %v1444_v33 = vadd.f32 %v3121_v55, %v4442_v20 }
 0x167   : > { %v1353_v60 = vpop.f32.mrf.mxu1  ;;  %v1578_v19 = vpop.f32.mrf.mxu0 }
 0x168   : > { %v4568_v8 = vadd.f32 %v3155_v14, %v1444_v33  ;;  %v1442_v29 = vadd.f32 %v1353_v60, %v4447_v41 }
 0x169   : > { %v3124_v11 = vpop.f32.mrf.mxu1  ;;  %v3159_v10 = vpop.f32.mrf.mxu0 }
 0x16a   : > { %v4571_v58 = vadd.f32 %v1565_v51, %v1442_v29  ;;  %v1447_v36 = vadd.f32 %v3124_v11, %v4452_v61 }
 0x16b   : > { %v1366_v25 = vpop.f32.mrf.mxu1  ;;  %v1581_v27 = vpop.f32.mrf.mxu0 }
 0x16c   : > { %v4574_v6 = vadd.f32 %v3158_v38, %v1447_v36  ;;  %v1445_v62 = vadd.f32 %v1366_v25, %v4457_v42 }
 0x16d   : > { %v3125_v13 = vpop.f32.mrf.mxu1  ;;  %v3162_v20 = vpop.f32.mrf.mxu0 }
 0x16e   : > { %v4577_v63 = vadd.f32 %v1578_v19, %v1445_v62  ;;  %v1448_v39 = vadd.f32 %v3125_v13, %v4462_v35 }
 0x16f   : > { %v1369_v5 = vpop.f32.mrf.mxu1  ;;  %v1594_v41 = vpop.f32.mrf.mxu0 }
 0x170   : > { %v4580_v12 = vadd.f32 %v3159_v10, %v1448_v39  ;;  %v1446_v15 = vadd.f32 %v1369_v5, %v4469_v40 }
 0x171   : > { %v3128_v31 = vpop.f32.mrf.mxu1  ;;  %v3163_v61 = vpop.f32.mrf.mxu0 }
 0x172   : > { %5071 = vst [vmem:[#allocation22_spill] sm:$0xff] %v4580_v12  ;;  %v4583_v43 = vadd.f32 %v1581_v27, %v1446_v15  ;;  %v1451_v0 = vadd.f32 %v3128_v31, %v4475_v34 }
 0x173   : > { %v1382_v48 = vpop.f32.mrf.mxu1  ;;  %v1597_v42 = vpop.f32.mrf.mxu0 }
 0x174   : > { %5072 = vst [vmem:[#allocation5_spill] sm:$0xff] %v4583_v43  ;;  %v4586_v57 = vadd.f32 %v3162_v20, %v1451_v0  ;;  %v1449_v1 = vadd.f32 %v1382_v48, %v4480_v18 }
 0x175   : > { %v3129_v14 = vpop.f32.mrf.mxu1  ;;  %v3166_v35 = vpop.f32.mrf.mxu0 }
 0x176   : > { %5073 = vst [vmem:[#allocation9_spill] sm:$0xff] %v4586_v57  ;;  %v4589_v26 = vadd.f32 %v1594_v41, %v1449_v1  ;;  %v1452_v54 = vadd.f32 %v3129_v14, %v4487_v7 }
 0x177   : > { %v1385_v51 = vpop.f32.mrf.mxu1  ;;  %v1610_v40 = vpop.f32.mrf.mxu0 }
 0x178   : > { %5074 = vst [vmem:[#allocation11_spill] sm:$0xff] %v4589_v26  ;;  %v4592_v2 = vadd.f32 %v3163_v61, %v1452_v54  ;;  %v1450_v55 = vadd.f32 %v1385_v51, %v4492_v47 }
 0x179   : > { %v3132_v38 = vpop.f32.mrf.mxu1  ;;  %v3167_v34 = vpop.f32.mrf.mxu0 }
 0x17a   : > { %5075 = vst [vmem:[#allocation14_spill] sm:$0xff] %v4592_v2  ;;  %v4595_v33 = vadd.f32 %v1597_v42, %v1450_v55  ;;  %v1455_v60 = vadd.f32 %v3132_v38, %v4497_v45 }
 0x17b   : > { %v1398_v19 = vpop.f32.mrf.mxu1  ;;  %v1613_v18 = vpop.f32.mrf.mxu0 }
 0x17c   : > { %5076 = vst [vmem:[#allocation17_spill] sm:$0xff] %v4595_v33  ;;  %v4598_v29 = vadd.f32 %v3166_v35, %v1455_v60  ;;  %v1453_v11 = vadd.f32 %v1398_v19, %v4501_v46 }
 0x17d   : > { %v3133_v10 = vpop.f32.mrf.mxu1  ;;  %v3170_v7 = vpop.f32.mrf.mxu0 }
 0x17e   : > { %5077 = vst [vmem:[#allocation20_spill] sm:$0xff] %v4598_v29  ;;  %v4601_v36 = vadd.f32 %v1610_v40, %v1453_v11  ;;  %v1456_v25 = vadd.f32 %v3133_v10, %v4504_v23 }
 0x17f   : > { %v1401_v27 = vpop.f32.mrf.mxu1  ;;  %v1626_v47 = vpop.f32.mrf.mxu0 }
 0x180   : > { %5078 = vst [vmem:[#allocation23_spill] sm:$0xff] %v4601_v36  ;;  %v4604_v62 = vadd.f32 %v3167_v34, %v1456_v25  ;;  %v1454_v13 = vadd.f32 %v1401_v27, %v4511_v59 }
 0x181   : > { %v3136_v20 = vpop.f32.mrf.mxu1  ;;  %v3171_v45 = vpop.f32.mrf.mxu0 }
 0x182   : > { %5079 = vst [vmem:[#allocation15_spill] sm:$0xff] %v4604_v62  ;;  %v4607_v39 = vadd.f32 %v1613_v18, %v1454_v13  ;;  %v1459_v5 = vadd.f32 %v3136_v20, %v4514_v17 }
 0x183   : > { %v1414_v41 = vpop.f32.mrf.mxu1  ;;  %v1629_v46 = vpop.f32.mrf.mxu0 }
 0x184   : > { %5080 = vst [vmem:[#allocation7_spill] sm:$0xff] %v4607_v39  ;;  %v4610_v15 = vadd.f32 %v3170_v7, %v1459_v5  ;;  %v1457_v31 = vadd.f32 %v1414_v41, %v4517_v44 }
 0x185   : > { %v3137_v61 = vpop.f32.mrf.mxu1  ;;  %v4613_v23 = vpop.f32.mrf.mxu0 }
 0x186   : > { %5081 = vst [vmem:[#allocation18_spill] sm:$0xff] %v4610_v15  ;;  %v4615_v0 = vadd.f32 %v1626_v47, %v1457_v31  ;;  %v1460_v48 = vadd.f32 %v3137_v61, %v4520_v22 }
 0x187   : > { %v1417_v59 = vpop.f32.mrf.mxu1  ;;  %v4618_v42 = vpop.f32.mrf.mxu0 }
 0x188   : > { %5082 = vst [vmem:[#allocation21_spill] sm:$0xff] %v4615_v0  ;;  %v4620_v1 = vadd.f32 %v3171_v45, %v1460_v48  ;;  %v1458_v17 = vadd.f32 %v1417_v59, %v4523_v24 }
 0x189   : > { %v3176_v14 = vpop.f32.mrf.mxu1  ;;  %v4623_v35 = vpop.f32.mrf.mxu0 }
 0x18a   : > { %5083 = vst [vmem:[#allocation6_spill] sm:$0xff] %v4620_v1  ;;  %v4625_v54 = vadd.f32 %v1629_v46, %v1458_v17 }
 0x18b   : > { %v1723_v44 = vpop.f32.mrf.mxu1  ;;  %v4627_v51 = vpop.f32.mrf.mxu0 }
 0x18c   : > { %5084 = vst [vmem:[#allocation12_spill] sm:$0xff] %v4625_v54 }
 0x18d   : > { %v4629_v40 = vpop.f32.mrf.mxu1  ;;  %v4631_v55 = vpop.f32.mrf.mxu0 }
 0x18f   : > { %v4633_v22 = vpop.f32.mrf.mxu1  ;;  %v4635_v38 = vpop.f32.mrf.mxu0 }
 0x191   : > { %v4637_v34 = vpop.f32.mrf.mxu1  ;;  %v4639_v60 = vpop.f32.mrf.mxu0 }
 0x193   : > { %v4641_v24 = vpop.f32.mrf.mxu1  ;;  %v4643_v19 = vpop.f32.mrf.mxu0 }
 0x195   : > { %v4645_v18 = vpop.f32.mrf.mxu1  ;;  %v4647_v11 = vpop.f32.mrf.mxu0 }
 0x197   : > { %v4649_v10 = vpop.f32.mrf.mxu1  ;;  %v4651_v7 = vpop.f32.mrf.mxu0 }
 0x199   : > { %v4653_v25 = vpop.f32.mrf.mxu1  ;;  %v4655_v27 = vpop.f32.mrf.mxu0 }
 0x19b   : > { %v4657_v47 = vpop.f32.mrf.mxu1  ;;  %v4659_v13 = vpop.f32.mrf.mxu0 }
 0x19d   : > { %v4661_v20 = vpop.f32.mrf.mxu1  ;;  %v4663_v45 = vpop.f32.mrf.mxu0 }
 0x19f   : > { %v4665_v5 = vpop.f32.mrf.mxu1  ;;  %v4667_v41 = vpop.f32.mrf.mxu0 }
 0x1a1   : > { %v4669_v46 = vpop.f32.mrf.mxu1  ;;  %v4671_v31 = vpop.f32.mrf.mxu0 }
 0x1a3   : > { %v4673_v61 = vpop.f32.mrf.mxu1  ;;  %v4675_v48 = vpop.f32.mrf.mxu0 }
 0x1a5   : > { %v4677_v59 = vpop.f32.mrf.mxu1  ;;  %v4679_v17 = vpop.f32.mrf.mxu0 }
 0x1a7   : > { %v4681_v54 = vpop.f32.mrf.mxu1  ;;  %v4683_v1 = vpop.f32.mrf.mxu0 }
 0x1a8   : > { %5085 = vst [vmem:[#allocation8_spill] sm:$0xff] %v4683_v1 }
 0x1a9   : > { %v4685_v0 = vpop.f32.mrf.mxu1  ;;  %v4687_v15 = vpop.f32.mrf.mxu0 }
 0x1aa   : > { %5086 = vst [vmem:[#allocation10_spill] sm:$0xff] %v4687_v15 }
 0x1ab   : > { %v4689_v39 = vpop.f32.mrf.mxu1  ;;  %v4691_v62 = vpop.f32.mrf.mxu0 }
 0x1ac   : > { %5087 = vst [vmem:[#allocation13_spill] sm:$0xff] %v4691_v62 }
 0x1ad   : > { %v4693_v36 = vpop.f32.mrf.mxu1  ;;  %v4695_v29 = vpop.f32.mrf.mxu0 }
 0x1ae   : > { %5088 = vst [vmem:[#allocation16_spill] sm:$0xff] %v4693_v36  ;;  %5089 = vst [vmem:[#allocation19_spill] sm:$0xff] %v4695_v29 }
 0x1af   : > { %v4697_v33 = vpop.f32.mrf.mxu1  ;;  %v4699_v2 = vpop.f32.mrf.mxu0 }
 0x1b0   : > { %5090 = vst [vmem:[#allocation24_spill] sm:$0xff] %v4697_v33  ;;  %5091 = vst [vmem:[#allocation25_spill] sm:$0xff] %v4699_v2 }
 0x1b1   : > { %v4701_v26 = vpop.f32.mrf.mxu1  ;;  %v4703_v57 = vpop.f32.mrf.mxu0 }
 0x1b2   : > { %5092 = vst [vmem:[#allocation26_spill] sm:$0xff] %v4701_v26  ;;  %5093 = vst [vmem:[#allocation27_spill] sm:$0xff] %v4703_v57 }
 0x1b3   : > { %v4705_v43 = vpop.f32.mrf.mxu1  ;;  %v4707_v1 = vpop.f32.mrf.mxu0 }
 0x1b4   : > { %5094 = vst [vmem:[#allocation28_spill] sm:$0xff] %v4705_v43  ;;  %5095 = vst [vmem:[#allocation29_spill] sm:$0xff] %v4707_v1 }
 0x1b5   : > { %v4709_v15 = vpop.f32.mrf.mxu1  ;;  %v4711_v12 = vpop.f32.mrf.mxu0 }
 0x1b6   : > { %5096 = vst [vmem:[#allocation30_spill] sm:$0xff] %v4709_v15  ;;  %5097 = vst [vmem:[#allocation31_spill] sm:$0xff] %v4711_v12 }
 0x1b7   : > { %v4713_v62 = vpop.f32.mrf.mxu1  ;;  %v4715_v36 = vpop.f32.mrf.mxu0 }
 0x1b8   : > { %5098 = vst [vmem:[#allocation32_spill] sm:$0xff] %v4713_v62  ;;  %5099 = vst [vmem:[#allocation33_spill] sm:$0xff] %v4715_v36 }
 0x1b9   : > { %v4717_v29 = vpop.f32.mrf.mxu1  ;;  %v4719_v33 = vpop.f32.mrf.mxu0 }
 0x1ba   : > { %5100 = vst [vmem:[#allocation34_spill] sm:$0xff] %v4717_v29  ;;  %5101 = vst [vmem:[#allocation35_spill] sm:$0xff] %v4719_v33 }
 0x1bb   : > { %v4721_v2 = vpop.f32.mrf.mxu1  ;;  %v4723_v26 = vpop.f32.mrf.mxu0 }
 0x1bc   : > { %5102 = vst [vmem:[#allocation36_spill] sm:$0xff] %v4721_v2  ;;  %5103 = vst [vmem:[#allocation37_spill] sm:$0xff] %v4723_v26  ;;  %v1852_v2 = vadd.f32 %v3176_v14, %v4526_v52  ;;  %v1851_v52 = vadd.f32 %v4633_v22, %v4535_v3  ;;  %v1854_v3 = vadd.f32 %v4641_v24, %v4541_v37 }
 0x1bd   : > { %v4725_v57 = vpop.f32.mrf.mxu1  ;;  %v4727_v43 = vpop.f32.mrf.mxu0 }
 0x1be   : > { %5104 = vst [vmem:[#allocation38_spill] sm:$0xff] %v4725_v57  ;;  %5105 = vst [vmem:[#allocation39_spill] sm:$0xff] %v4727_v43  ;;  %v1850_v43 = vadd.f32 %v1723_v44, %v4529_v32  ;;  %v1856_v32 = vadd.f32 %v4637_v34, %v4538_v53  ;;  %v4759_v44 = vld [vmem:[%s4966_s2] ss:$0 sm:$0xff]  ;;  %v2053_v53 = vadd.f32 %v4627_v51, %v1851_v52 }
 0x1bf   : > { %v4729_v1 = vpop.f32.mrf.mxu1  ;;  %v4731_v12 = vpop.f32.mrf.mxu0  ;;  %v2056_v24 = vadd.f32 %v4635_v38, %v1854_v3  ;;  %v1855_v51 = vadd.f32 %v4649_v10, %v4547_v50  ;;  %v1860_v38 = vadd.f32 %v4653_v25, %v4550_v28 }
 0x1c0   : > { %5106 = vst [vmem:[#allocation40_spill] sm:$0xff] %v4729_v1  ;;  %5107 = vst [vmem:[#allocation41_spill] sm:$0xff] %v4731_v12  ;;  %v2054_v12 = vadd.f32 %v4613_v23, %v1852_v2 }
 0x1c1   : > { %v4733_v62 = vpop.f32.mrf.mxu1  ;;  %v4735_v36 = vpop.f32.mrf.mxu0  ;;  %v2057_v3 = vadd.f32 %v4643_v19, %v1855_v51 }
 0x1c2   : > { %5108 = vst [vmem:[#allocation42_spill] sm:$0xff] %v4733_v62  ;;  %5109 = vst [vmem:[#allocation43_spill] sm:$0xff] %v4735_v36  ;;  %v1853_v36 = vadd.f32 %v4629_v40, %v4532_v49 }
 0x1c3   : > { %v4737_v29 = vpop.f32.mrf.mxu1  ;;  %v4739_v33 = vpop.f32.mrf.mxu0 }
 0x1c4   : > { %5110 = vst [vmem:[#allocation44_spill] sm:$0xff] %v4737_v29  ;;  %5111 = vst [vmem:[#allocation45_spill] sm:$0xff] %v4739_v33  ;;  %v2052_v33 = vadd.f32 %v4618_v42, %v1850_v43  ;;  %v2055_v49 = vadd.f32 %v4623_v35, %v1853_v36  ;;  %v1857_v36 = vadd.f32 %v4645_v18, %v4544_v16 }
 0x1c5   : > { %v4742_v26 = vpop.f32.mrf.mxu1  ;;  %v3278_v57 = vpop.f32.mrf.mxu0 }
 0x1c6   : > { %5112 = vst [vmem:[#allocation46_spill] sm:$0xff] %v4742_v26 }
 0x1c7   : > { %v4745_v15 = vpop.f32.mrf.mxu1  ;;  %v2346_v1 = vpop.f32.mrf.mxu0 }
 0x1c8   : > { %5113 = vst [vmem:[#allocation47_spill] sm:$0xff] %v4745_v15  ;;  %v2058_v15 = vadd.f32 %v4631_v55, %v1856_v32 }
 0x1c9   : > { %v3244_v62 = vpop.f32.mrf.mxu1  ;;  %v3279_v29 = vpop.f32.mrf.mxu0 }
 0x1ca   : > { %v2266_v14 = vadd.f32 %v3244_v62, %v2054_v12 }
 0x1cb   : > { %v2137_v2 = vpop.f32.mrf.mxu1  ;;  %v2349_v23 = vpop.f32.mrf.mxu0 }
 0x1cc   : > { %v2475_v40 = vadd.f32 %v3278_v57, %v2266_v14  ;;  %v2264_v43 = vadd.f32 %v2137_v2, %v2052_v33 }
 0x1cd   : > { %v3245_v12 = vpop.f32.mrf.mxu1  ;;  %v3282_v62 = vpop.f32.mrf.mxu0 }
 0x1ce   : > { %v2514_v42 = vadd.f32 %v4759_v44, %v2475_v40  ;;  %v2473_v22 = vadd.f32 %v2346_v1, %v2264_v43  ;;  %v2267_v34 = vadd.f32 %v3245_v12, %v2055_v49 }
 0x1cf   : > { %v2140_v35 = vpop.f32.mrf.mxu1  ;;  %v2362_v26 = vpop.f32.mrf.mxu0 }
 0x1d0   : > { %v2546_v57 = vmax.f32 %v2514_v42, 0.0  ;;  %v2512_v33 = vadd.f32 %v4759_v44, %v2473_v22  ;;  %v2476_v14 = vadd.f32 %v3279_v29, %v2267_v34  ;;  %v2265_v37 = vadd.f32 %v2140_v35, %v2053_v53 }
 0x1d1   : > { %v3248_v52 = vpop.f32.mrf.mxu1  ;;  %v3283_v1 = vpop.f32.mrf.mxu0  ;;  %v2059_v29 = vadd.f32 %v4639_v60, %v1857_v36  ;;  %v2062_v42 = vadd.f32 %v4647_v11, %v1860_v38 }
 0x1d2   : > { %2578 = vst [vmem:[%s4775_s6 + $0x10] sm:$0xff] %v2546_v57  ;;  %v2544_v16 = vmax.f32 %v2512_v33, 0.0  ;;  %v2515_v55 = vadd.f32 %v4759_v44, %v2476_v14  ;;  %v2474_v18 = vadd.f32 %v2349_v23, %v2265_v37  ;;  %v2270_v32 = vadd.f32 %v3248_v52, %v2058_v15 }
 0x1d3   : > { %v2153_v2 = vpop.f32.mrf.mxu1  ;;  %v2365_v50 = vpop.f32.mrf.mxu0  ;;  %v1858_v23 = vadd.f32 %v4657_v47, %v4553_v30 }
 0x1d4   : > { %2576 = vst [vmem:[%s4775_s6] sm:$0xff] %v2544_v16  ;;  %v2547_v10 = vmax.f32 %v2515_v55, 0.0  ;;  %v2513_v49 = vadd.f32 %v4759_v44, %v2474_v18  ;;  %v2479_v40 = vadd.f32 %v3282_v62, %v2270_v32  ;;  %v2268_v43 = vadd.f32 %v2153_v2, %v2056_v24 }
 0x1d5   : > { %v3249_v15 = vpop.f32.mrf.mxu1  ;;  %v3286_v12 = vpop.f32.mrf.mxu0  ;;  %v1861_v62 = vadd.f32 %v4661_v20, %v4556_v56  ;;  %v2060_v35 = vadd.f32 %v4651_v7, %v1858_v23  ;;  %v1864_v24 = vadd.f32 %v4669_v46, %v4562_v9  ;;  %v1862_v55 = vadd.f32 %v4673_v61, %v4565_v4 }
 0x1d6   : > { %2579 = vst [vmem:[%s4775_s6 + $0x18] sm:$0xff] %v2547_v10  ;;  %v2545_v60 = vmax.f32 %v2513_v49, 0.0  ;;  %v2518_v28 = vadd.f32 %v4759_v44, %v2479_v40  ;;  %v2477_v25 = vadd.f32 %v2362_v26, %v2268_v43  ;;  %v2271_v53 = vadd.f32 %v3249_v15, %v2059_v29 }
 0x1d7   : > { %v2156_v22 = vpop.f32.mrf.mxu1  ;;  %v2378_v34 = vpop.f32.mrf.mxu0  ;;  %v1859_v26 = vadd.f32 %v4665_v5, %v4559_v21  ;;  %v2063_v37 = vadd.f32 %v4655_v27, %v1861_v62  ;;  %v2066_v38 = vadd.f32 %v4663_v45, %v1864_v24  ;;  %v1865_v2 = vadd.f32 %v4677_v59, %v4568_v8 }
 0x1d8   : > { %2577 = vst [vmem:[%s4775_s6 + $0x8] sm:$0xff] %v2545_v60  ;;  %v2550_v19 = vmax.f32 %v2518_v28, 0.0  ;;  %v2516_v30 = vadd.f32 %v4759_v44, %v2477_v25  ;;  %v2480_v47 = vadd.f32 %v3283_v1, %v2271_v53  ;;  %v2269_v36 = vadd.f32 %v2156_v22, %v2057_v3 }
 0x1d9   : > { %v3252_v57 = vpop.f32.mrf.mxu1  ;;  %v3287_v33 = vpop.f32.mrf.mxu0  ;;  %v2061_v16 = vadd.f32 %v4659_v13, %v1859_v26  ;;  %v2064_v40 = vadd.f32 %v4667_v41, %v1862_v55  ;;  %v1863_v43 = vadd.f32 %v4681_v54, %v4571_v58  ;;  %v1868_v60 = vadd.f32 %v4685_v0, %v4574_v6  ;;  %v5121_v55 = vld [vmem:[#allocation26_spill] sm:$0xff] }
 0x1da   : > { %2582 = vst [vmem:[%s4775_s6 + $0x30] sm:$0xff] %v2550_v19  ;;  %v2548_v11 = vmax.f32 %v2516_v30, 0.0  ;;  %v2519_v56 = vadd.f32 %v4759_v44, %v2480_v47  ;;  %v2478_v20 = vadd.f32 %v2365_v50, %v2269_v36  ;;  %v2274_v14 = vadd.f32 %v3252_v57, %v2062_v42  ;;  %v5114_v47 = vld [vmem:[#allocation22_spill] sm:$0xff]  ;;  %v5115_v36 = vld [vmem:[#allocation16_spill] sm:$0xff] }
 0x1db   : > { %v2169_v51 = vpop.f32.mrf.mxu1  ;;  %v2381_v52 = vpop.f32.mrf.mxu0  ;;  %v2065_v42 = vadd.f32 %v4675_v48, %v1863_v43  ;;  %v1866_v62 = vadd.f32 %v4689_v39, %v4577_v63  ;;  %v2070_v30 = vadd.f32 %v4679_v17, %v1868_v60 }
 0x1dc   : > { %2580 = vst [vmem:[%s4775_s6 + $0x20] sm:$0xff] %v2548_v11  ;;  %v2551_v7 = vmax.f32 %v2519_v56, 0.0  ;;  %v2517_v21 = vadd.f32 %v4759_v44, %v2478_v20  ;;  %v2483_v5 = vadd.f32 %v3286_v12, %v2274_v14  ;;  %v2272_v1 = vadd.f32 %v2169_v51, %v2060_v35  ;;  %v5116_v11 = vld [vmem:[#allocation8_spill] sm:$0xff]  ;;  %v5117_v20 = vld [vmem:[#allocation5_spill] sm:$0xff] }
 0x1dd   : > { %v3253_v18 = vpop.f32.mrf.mxu1  ;;  %v3290_v32 = vpop.f32.mrf.mxu0  ;;  %v2067_v12 = vadd.f32 %v4671_v31, %v1865_v2  ;;  %v1869_v35 = vadd.f32 %v5115_v36, %v5114_v47  ;;  %v2068_v56 = vadd.f32 %v5116_v11, %v1866_v62  ;;  %v5118_v14 = vld [vmem:[#allocation24_spill] sm:$0xff]  ;;  %v5122_v2 = vld [vmem:[#allocation13_spill] sm:$0xff]  ;;  %v5131_v36 = vld [vmem:[#allocation27_spill] sm:$0xff] }
 0x1de   : > { %2583 = vst [vmem:[%s4775_s6 + $0x38] sm:$0xff] %v2551_v7  ;;  %v2549_v27 = vmax.f32 %v2517_v21, 0.0  ;;  %v2522_v9 = vadd.f32 %v4759_v44, %v2483_v5  ;;  %v2481_v46 = vadd.f32 %v2378_v34, %v2272_v1  ;;  %v2275_v29 = vadd.f32 %v3253_v18, %v2063_v37  ;;  %v5119_v5 = vld [vmem:[#allocation10_spill] sm:$0xff]  ;;  %v5129_v62 = vld [vmem:[#allocation17_spill] sm:$0xff] }
 0x1df   : > { %v2172_v50 = vpop.f32.mrf.mxu1  ;;  %v2394_v10 = vpop.f32.mrf.mxu0  ;;  %v1867_v37 = vadd.f32 %v5118_v14, %v5117_v20  ;;  %v2071_v1 = vadd.f32 %v5119_v5, %v1869_v35  ;;  %v5134_v14 = vld [vmem:[#allocation29_spill] sm:$0xff] }
 0x1e0   : > { %2581 = vst [vmem:[%s4775_s6 + $0x28] sm:$0xff] %v2549_v27  ;;  %v2554_v13 = vmax.f32 %v2522_v9, 0.0  ;;  %v2520_v4 = vadd.f32 %v4759_v44, %v2481_v46  ;;  %v2484_v61 = vadd.f32 %v3287_v33, %v2275_v29  ;;  %v2273_v49 = vadd.f32 %v2172_v50, %v2061_v16  ;;  %v5120_v16 = vld [vmem:[#allocation9_spill] sm:$0xff] }
 0x1e1   : > { %v3256_v3 = vpop.f32.mrf.mxu1  ;;  %v3291_v23 = vpop.f32.mrf.mxu0  ;;  %v1872_v18 = vadd.f32 %v5121_v55, %v5120_v16  ;;  %v2069_v50 = vadd.f32 %v5122_v2, %v1867_v37  ;;  %v5137_v55 = vld [vmem:[#allocation31_spill] sm:$0xff] }
 0x1e2   : > { %2586 = vst [vmem:[%s4775_s6 + $0x50] sm:$0xff] %v2554_v13  ;;  %v2552_v45 = vmax.f32 %v2520_v4, 0.0  ;;  %v2523_v8 = vadd.f32 %v4759_v44, %v2484_v61  ;;  %v2482_v59 = vadd.f32 %v2381_v52, %v2273_v49  ;;  %v2278_v15 = vadd.f32 %v3256_v3, %v2066_v38  ;;  %v5124_v13 = vld [vmem:[#allocation28_spill] sm:$0xff] }
 0x1e3   : > { %v2185_v28 = vpop.f32.mrf.mxu1  ;;  %v2397_v25 = vpop.f32.mrf.mxu0 }
 0x1e4   : > { %2584 = vst [vmem:[%s4775_s6 + $0x40] sm:$0xff] %v2552_v45  ;;  %v2555_v41 = vmax.f32 %v2523_v8, 0.0  ;;  %v2521_v58 = vadd.f32 %v4759_v44, %v2482_v59  ;;  %v2487_v54 = vadd.f32 %v3290_v32, %v2278_v15  ;;  %v2276_v53 = vadd.f32 %v2185_v28, %v2064_v40  ;;  %v5125_v45 = vld [vmem:[#allocation19_spill] sm:$0xff]  ;;  %v5126_v59 = vld [vmem:[#allocation14_spill] sm:$0xff] }
 0x1e5   : > { %v3257_v22 = vpop.f32.mrf.mxu1  ;;  %v3294_v34 = vpop.f32.mrf.mxu0  ;;  %v2074_v8 = vadd.f32 %v5125_v45, %v1872_v18  ;;  %v5127_v15 = vld [vmem:[#allocation30_spill] sm:$0xff] }
 0x1e6   : > { %2587 = vst [vmem:[%s4775_s6 + $0x58] sm:$0xff] %v2555_v41  ;;  %v2553_v31 = vmax.f32 %v2521_v58, 0.0  ;;  %v2526_v6 = vadd.f32 %v4759_v44, %v2487_v54  ;;  %v2485_v0 = vadd.f32 %v2394_v10, %v2276_v53  ;;  %v2279_v19 = vadd.f32 %v3257_v22, %v2067_v12  ;;  %v5123_v10 = vld [vmem:[#allocation11_spill] sm:$0xff]  ;;  %v5128_v53 = vld [vmem:[#allocation25_spill] sm:$0xff]  ;;  %v5130_v22 = vld [vmem:[#allocation32_spill] sm:$0xff] }
 0x1e7   : > { %v2188_v26 = vpop.f32.mrf.mxu1  ;;  %v2410_v57 = vpop.f32.mrf.mxu0  ;;  %v1870_v4 = vadd.f32 %v5124_v13, %v5123_v10  ;;  %v1873_v12 = vadd.f32 %v5127_v15, %v5126_v59  ;;  %v5140_v13 = vld [vmem:[#allocation33_spill] sm:$0xff]  ;;  %v5143_v15 = vld [vmem:[#allocation35_spill] sm:$0xff] }
 0x1e8   : > { %2585 = vst [vmem:[%s4775_s6 + $0x48] sm:$0xff] %v2553_v31  ;;  %v2558_v48 = vmax.f32 %v2526_v6, 0.0  ;;  %v2524_v63 = vadd.f32 %v4759_v44, %v2485_v0  ;;  %v2488_v39 = vadd.f32 %v3291_v23, %v2279_v19  ;;  %v2277_v33 = vadd.f32 %v2188_v26, %v2065_v42  ;;  %v5132_v26 = vld [vmem:[#allocation20_spill] sm:$0xff] }
 0x1e9   : > { %v3260_v24 = vpop.f32.mrf.mxu1  ;;  %v3295_v51 = vpop.f32.mrf.mxu0  ;;  %v2072_v42 = vadd.f32 %v5128_v53, %v1870_v4  ;;  %v2075_v35 = vadd.f32 %v5131_v36, %v1873_v12 }
 0x1ea   : > { %2590 = vst [vmem:[%s4775_s6 + $0x70] sm:$0xff] %v2558_v48  ;;  %v2556_v17 = vmax.f32 %v2524_v63, 0.0  ;;  %v2527_v52 = vadd.f32 %v4759_v44, %v2488_v39  ;;  %v2486_v7 = vadd.f32 %v2397_v25, %v2277_v33  ;;  %v2282_v21 = vadd.f32 %v3260_v24, %v2070_v30  ;;  %v5135_v24 = vld [vmem:[#allocation23_spill] sm:$0xff] }
 0x1eb   : > { %v2201_v32 = vpop.f32.mrf.mxu1  ;;  %v2413_v27 = vpop.f32.mrf.mxu0 }
 0x1ec   : > { %2588 = vst [vmem:[%s4775_s6 + $0x60] sm:$0xff] %v2556_v17  ;;  %v2559_v9 = vmax.f32 %v2527_v52, 0.0  ;;  %v2525_v46 = vadd.f32 %v4759_v44, %v2486_v7  ;;  %v2491_v29 = vadd.f32 %v3294_v34, %v2282_v21  ;;  %v2280_v38 = vadd.f32 %v2201_v32, %v2068_v56  ;;  %v5138_v32 = vld [vmem:[#allocation15_spill] sm:$0xff] }
 0x1ed   : > { %v3261_v61 = vpop.f32.mrf.mxu1  ;;  %v3298_v49 = vpop.f32.mrf.mxu0  ;;  %v1871_v34 = vadd.f32 %v5130_v22, %v5129_v62  ;;  %v5146_v22 = vld [vmem:[#allocation37_spill] sm:$0xff] }
 0x1ee   : > { %2591 = vst [vmem:[%s4775_s6 + $0x78] sm:$0xff] %v2559_v9  ;;  %v2557_v40 = vmax.f32 %v2525_v46, 0.0  ;;  %v2530_v43 = vadd.f32 %v4759_v44, %v2491_v29  ;;  %v2489_v3 = vadd.f32 %v2410_v57, %v2280_v38  ;;  %v2283_v23 = vadd.f32 %v3261_v61, %v2071_v1  ;;  %v5133_v57 = vld [vmem:[#allocation34_spill] sm:$0xff]  ;;  %v5141_v61 = vld [vmem:[#allocation7_spill] sm:$0xff] }
 0x1ef   : > { %v2204_v60 = vpop.f32.mrf.mxu1  ;;  %v2426_v28 = vpop.f32.mrf.mxu0  ;;  %v1876_v48 = vadd.f32 %v5133_v57, %v5132_v26  ;;  %v2073_v37 = vadd.f32 %v5134_v14, %v1871_v34  ;;  %v5149_v57 = vld [vmem:[#allocation39_spill] sm:$0xff] }
 0x1f0   : > { %2589 = vst [vmem:[%s4775_s6 + $0x68] sm:$0xff] %v2557_v40  ;;  %v2562_v25 = vmax.f32 %v2530_v43, 0.0  ;;  %v2528_v41 = vadd.f32 %v4759_v44, %v2489_v3  ;;  %v2492_v58 = vadd.f32 %v3295_v51, %v2283_v23  ;;  %v2281_v54 = vadd.f32 %v2204_v60, %v2069_v50  ;;  %v5136_v51 = vld [vmem:[#allocation36_spill] sm:$0xff]  ;;  %v5144_v60 = vld [vmem:[#allocation18_spill] sm:$0xff] }
 0x1f1   : > { %v3264_v31 = vpop.f32.mrf.mxu1  ;;  %v3299_v6 = vpop.f32.mrf.mxu0  ;;  %v1874_v17 = vadd.f32 %v5136_v51, %v5135_v24  ;;  %v2078_v18 = vadd.f32 %v5137_v55, %v1876_v48  ;;  %v5152_v24 = vld [vmem:[#allocation41_spill] sm:$0xff] }
 0x1f2   : > { %2594 = vst [vmem:[%s4775_s6 + $0x90] sm:$0xff] %v2562_v25  ;;  %v2560_v0 = vmax.f32 %v2528_v41, 0.0  ;;  %v2531_v19 = vadd.f32 %v4759_v44, %v2492_v58  ;;  %v2490_v30 = vadd.f32 %v2413_v27, %v2281_v54  ;;  %v2286_v47 = vadd.f32 %v3264_v31, %v2074_v8  ;;  %v5139_v27 = vld [vmem:[#allocation38_spill] sm:$0xff]  ;;  %v5147_v31 = vld [vmem:[#allocation21_spill] sm:$0xff] }
 0x1f3   : > { %v2217_v63 = vpop.f32.mrf.mxu1  ;;  %v2429_v39 = vpop.f32.mrf.mxu0  ;;  %v1877_v9 = vadd.f32 %v5139_v27, %v5138_v32  ;;  %v2076_v4 = vadd.f32 %v5140_v13, %v1874_v17  ;;  %v5153_v17 = vld [vmem:[#allocation12_spill] sm:$0xff]  ;;  %v5155_v32 = vld [vmem:[#allocation43_spill] sm:$0xff] }
 0x1f4   : > { %2592 = vst [vmem:[%s4775_s6 + $0x80] sm:$0xff] %v2560_v0  ;;  %v2563_v33 = vmax.f32 %v2531_v19, 0.0  ;;  %v2529_v11 = vadd.f32 %v4759_v44, %v2490_v30  ;;  %v2495_v56 = vadd.f32 %v3298_v49, %v2286_v47  ;;  %v2284_v20 = vadd.f32 %v2217_v63, %v2072_v42  ;;  %v5142_v49 = vld [vmem:[#allocation40_spill] sm:$0xff]  ;;  %v5150_v63 = vld [vmem:[#allocation6_spill] sm:$0xff] }
 0x1f5   : > { %v3265_v52 = vpop.f32.mrf.mxu1  ;;  %v3302_v7 = vpop.f32.mrf.mxu0  ;;  %v1875_v40 = vadd.f32 %v5142_v49, %v5141_v61  ;;  %v2079_v12 = vadd.f32 %v5143_v15, %v1877_v9 }
 0x1f6   : > { %2595 = vst [vmem:[%s4775_s6 + $0x98] sm:$0xff] %v2563_v33  ;;  %v2561_v21 = vmax.f32 %v2529_v11, 0.0  ;;  %v2534_v5 = vadd.f32 %v4759_v44, %v2495_v56  ;;  %v2493_v1 = vadd.f32 %v2426_v28, %v2284_v20  ;;  %v2287_v16 = vadd.f32 %v3265_v52, %v2075_v35  ;;  %v5145_v28 = vld [vmem:[#allocation42_spill] sm:$0xff]  ;;  %v5154_v52 = vld [vmem:[#allocation47_spill] sm:$0xff] }
 0x1f7   : > { %v2220_v46 = vpop.f32.mrf.mxu1  ;;  %v2442_v29 = vpop.f32.mrf.mxu0  ;;  %v1880_v25 = vadd.f32 %v5145_v28, %v5144_v60  ;;  %v2077_v34 = vadd.f32 %v5146_v22, %v1875_v40 }
 0x1f8   : > { %2593 = vst [vmem:[%s4775_s6 + $0x88] sm:$0xff] %v2561_v21  ;;  %v2566_v38 = vmax.f32 %v2534_v5, 0.0  ;;  %v2532_v2 = vadd.f32 %v4759_v44, %v2493_v1  ;;  %v2496_v50 = vadd.f32 %v3299_v6, %v2287_v16  ;;  %v2285_v10 = vadd.f32 %v2220_v46, %v2073_v37  ;;  %v5148_v6 = vld [vmem:[#allocation44_spill] sm:$0xff] }
 0x1f9   : > { %v3268_v43 = vpop.f32.mrf.mxu1  ;;  %v3303_v3 = vpop.f32.mrf.mxu0  ;;  %v1878_v0 = vadd.f32 %v5148_v6, %v5147_v31  ;;  %v2082_v48 = vadd.f32 %v5149_v57, %v1880_v25 }
 0x1fa   : > { %2598 = vst [vmem:[%s4775_s6 + $0xb0] sm:$0xff] %v2566_v38  ;;  %v2564_v23 = vmax.f32 %v2532_v2, 0.0  ;;  %v2535_v45 = vadd.f32 %v4759_v44, %v2496_v50  ;;  %v2494_v8 = vadd.f32 %v2429_v39, %v2285_v10  ;;  %v2290_v59 = vadd.f32 %v3268_v43, %v2078_v18  ;;  %v5151_v39 = vld [vmem:[#allocation46_spill] sm:$0xff]  ;;  %v5156_v50 = vld [vmem:[#allocation45_spill] sm:$0xff] }
 0x1fb   : > { %v2233_v41 = vpop.f32.mrf.mxu1  ;;  %v2445_v58 = vpop.f32.mrf.mxu0  ;;  %v1881_v33 = vadd.f32 %v5151_v39, %v5150_v63  ;;  %v2080_v51 = vadd.f32 %v5152_v24, %v1878_v0 }
 0x1fc   : > { %2596 = vst [vmem:[%s4775_s6 + $0xa0] sm:$0xff] %v2564_v23  ;;  %v2567_v54 = vmax.f32 %v2535_v45, 0.0  ;;  %v2533_v53 = vadd.f32 %v4759_v44, %v2494_v8  ;;  %v2499_v42 = vadd.f32 %v3302_v7, %v2290_v59  ;;  %v2288_v62 = vadd.f32 %v2233_v41, %v2076_v4 }
 0x1fd   : > { %v3269_v19 = vpop.f32.mrf.mxu1  ;;  %v3306_v30 = vpop.f32.mrf.mxu0  ;;  %v1879_v7 = vadd.f32 %v5154_v52, %v5153_v17  ;;  %v2083_v27 = vadd.f32 %v5155_v32, %v1881_v33 }
 0x1fe   : > { %2599 = vst [vmem:[%s4775_s6 + $0xb8] sm:$0xff] %v2567_v54  ;;  %v2565_v47 = vmax.f32 %v2533_v53, 0.0  ;;  %v2538_v36 = vadd.f32 %v4759_v44, %v2499_v42  ;;  %v2497_v35 = vadd.f32 %v2442_v29, %v2288_v62  ;;  %v2291_v26 = vadd.f32 %v3269_v19, %v2079_v12 }
 0x1ff   : > { %v2236_v11 = vpop.f32.mrf.mxu1  ;;  %v2458_v5 = vpop.f32.mrf.mxu0  ;;  %v2081_v10 = vadd.f32 %v5156_v50, %v1879_v7 }
 0x200   : > { %2597 = vst [vmem:[%s4775_s6 + $0xa8] sm:$0xff] %v2565_v47  ;;  %v2570_v56 = vmax.f32 %v2538_v36, 0.0  ;;  %v2536_v20 = vadd.f32 %v4759_v44, %v2497_v35  ;;  %v2500_v14 = vadd.f32 %v3303_v3, %v2291_v26  ;;  %v2289_v37 = vadd.f32 %v2236_v11, %v2077_v34 }
 0x201   : > { %v3272_v21 = vpop.f32.mrf.mxu1  ;;  %v3307_v4 = vpop.f32.mrf.mxu0 }
 0x202   : > { %2602 = vst [vmem:[%s4775_s6 + $0xd0] sm:$0xff] %v2570_v56  ;;  %v2568_v1 = vmax.f32 %v2536_v20, 0.0  ;;  %v2539_v16 = vadd.f32 %v4759_v44, %v2500_v14  ;;  %v2498_v55 = vadd.f32 %v2445_v58, %v2289_v37  ;;  %v2294_v18 = vadd.f32 %v3272_v21, %v2082_v48 }
 0x203   : > { %v2249_v9 = vpop.f32.mrf.mxu1  ;;  %v2461_v15 = vpop.f32.mrf.mxu0 }
 0x204   : > { %2600 = vst [vmem:[%s4775_s6 + $0xc0] sm:$0xff] %v2568_v1  ;;  %v2571_v46 = vmax.f32 %v2539_v16, 0.0  ;;  %v2537_v29 = vadd.f32 %v4759_v44, %v2498_v55  ;;  %v2503_v38 = vadd.f32 %v3306_v30, %v2294_v18  ;;  %v2292_v2 = vadd.f32 %v2249_v9, %v2080_v51 }
 0x205   : > { %v3273_v13 = vpop.f32.mrf.mxu1 }
 0x206   : > { %2603 = vst [vmem:[%s4775_s6 + $0xd8] sm:$0xff] %v2571_v46  ;;  %v2569_v61 = vmax.f32 %v2537_v29, 0.0  ;;  %v2542_v49 = vadd.f32 %v4759_v44, %v2503_v38  ;;  %v2501_v40 = vadd.f32 %v2458_v5, %v2292_v2  ;;  %v2295_v43 = vadd.f32 %v3273_v13, %v2083_v27 }
 0x207   : > { %v2252_v3 = vpop.f32.mrf.mxu1 }
 0x208   : > { %2601 = vst [vmem:[%s4775_s6 + $0xc8] sm:$0xff] %v2569_v61  ;;  %v2574_v23 = vmax.f32 %v2542_v49, 0.0  ;;  %v2540_v45 = vadd.f32 %v4759_v44, %v2501_v40  ;;  %v2504_v8 = vadd.f32 %v3307_v4, %v2295_v43  ;;  %v2293_v59 = vadd.f32 %v2252_v3, %v2081_v10 }
 0x20a   : > { %2606 = vst [vmem:[%s4775_s6 + $0xf0] sm:$0xff] %v2574_v23  ;;  %v2572_v12 = vmax.f32 %v2540_v45, 0.0  ;;  %v2543_v60 = vadd.f32 %v4759_v44, %v2504_v8  ;;  %v2502_v28 = vadd.f32 %v2461_v15, %v2293_v59 }
 0x20c   : > { %2604 = vst [vmem:[%s4775_s6 + $0xe0] sm:$0xff] %v2572_v12  ;;  %v2575_v25 = vmax.f32 %v2543_v60, 0.0  ;;  %v2541_v41 = vadd.f32 %v4759_v44, %v2502_v28 }
 0x20e   : > { %2607 = vst [vmem:[%s4775_s6 + $0xf8] sm:$0xff] %v2575_v25  ;;  %v2573_v58 = vmax.f32 %v2541_v41, 0.0 }
 0x210   : > { %2605 = vst [vmem:[%s4775_s6 + $0xe8] sm:$0xff] %v2573_v58 }
 0x211   : > { %3375 = shalt.err (!%p3372_p3)
}
 0x212   : > { %s3376_s25 = scalar_lea.hbm %s4916_s11, 4096  ;;  %s3380_s28 = scalar_lea.hbm %s4967_s3, 8192 }
 0x213   : > { %p3377_p4 = scmp.ne.s32.totalorder %s4916_s11, %s3376_s25  ;;  %p3381_p9 = scmp.lt.s32.totalorder %s4916_s11, %s4967_s3 }
 0x214   : > { %p3382_p10 = scmp.lt.s32.totalorder %s3380_s28, %s3376_s25 }
 0x215   : > { %p3378_p7 = pnand %p3377_p4, %p3485_p5 }
 0x216   : > { %p3383_p11 = por %p3382_p10, %p3381_p9 }
 0x217   : > { %p3379_p8 = pneg %p3378_p7 }
 0x219   : > { %p3384_p12 = pnand %p3383_p11, %p3379_p8 }
 0x21b   : > { %3387 = shalt.err (!%p3384_p12)
}
 0x21c   : > { %s3425_s4 = smov 128   ;;  %s3426_s5 = smov 8  }
 0x21d   : > { %3321 = dma.vmem_to_hbm [thread:$0]  (%p3485_p5), %s4918_s8, 4096, %s4916_s11, %s4924_s16, %s3425_s4, %s3425_s4, %s3426_s5  }
 0x21e PF: > { %p3327_p13 = scmp.ge.s32.totalorder %s3422_s15, 2  ;;  %s2637_s6 = sand.u32 1, %s3410_s12  }
 0x21f   : > { %s2638_s7 = scalar_lea.sflag [#allocation3], %s2637_s6 }
 0x220   : > { %p3324_p0 = pnand %p3327_p13, %p3489_p6 }
 0x222   : > { %p3325_p1 = pneg %p3324_p0 }
 0x224   : > { %3405 = dma.done.wait (%p3325_p1), %s2638_s7, 4096  }
 0x225   : > { %3407 = vsyncadd (%p3325_p1), %s2638_s7, 4294963200  ;;  %p13_p2 = scmp.ge.s32.totalorder %s3472_s18, 4   ;;  %s5157_s12 = smov %s3414_s13 }
 0x226   : > { %s5158_s13 = smov %s3418_s14  ;;  %s5159_s14 = smov %s3483_s21 }
 0x227   : > { %s5160_s15 = smov %s3472_s18  ;;  %15 = sbr.rel (!%p13_p2) target bundleno = 3 (0x3), region = 75 }
 0x22c   :  { %2643 = vsyncpa [#allocation3], 1 }
 0x22d   :  { %2645 = vsyncpa [#allocation3 + $0x1], 1 }

</bundles_post_ra>
